<compile_context>
chip_gen: v5e
topology: v5e:2x2
jax: 0.10.0
libtpu: 0.0.40
codegen_flags: <defaults>
</compile_context>

<pallas_src>
import functools

import jax
import jax.numpy as jnp
from jax import lax
from jax.experimental import pallas as pl
from jax.experimental.pallas import tpu as pltpu


def _round_up(n, m):
    return ((n + m - 1) // m) * m


def lstm_survival_kernel(x_ref, w_ih_ref, b_ref, w_hh_ref, fc_w_ref, fc_b_ref,
                         out_ref, *, matmul_dtype):
    """One batch-tile of the LSTM recurrence + linear head.

    x_ref:     (T, B_tile, 1)   f32  time-major raw input
    w_ih_ref:  (1, 4*H_pad)     f32  input weights (per-gate zero-padded)
    b_ref:     (1, 4*H_pad)     f32  b_ih + b_hh   (per-gate zero-padded)
    w_hh_ref:  (H_pad, 4*H_pad) f32/bf16  recurrent weights (transposed, padded)
    fc_w_ref:  (1, H_pad)       f32  fc.weight (padded)
    fc_b_ref:  (1, 128)         f32  fc.bias broadcast along lanes
    out_ref:   (B_tile, 128)    f32  risk replicated along lanes
    """
    T, B, _ = x_ref.shape
    G = w_hh_ref.shape[1]
    H = G // 4

    h0 = jnp.zeros((B, H), jnp.float32)
    c0 = jnp.zeros((B, H), jnp.float32)

    def sigmoid(z):
        # single EUP tanh instead of exp + reciprocal
        return 0.5 * (jnp.tanh(0.5 * z) + 1.0)

    def step(t, carry):
        h, c = carry
        x_t = x_ref[t]                            # (B, 1), free leading-axis offset
        hm = h.astype(matmul_dtype)

        def gate(g):
            sl = slice(g * H, (g + 1) * H)        # static, 128-lane aligned
            # per-gate recurrent dot: w_hh streamed from VMEM a gate at a time,
            # result consumed immediately -> live intermediate is only (B, H).
            rec = jnp.dot(hm, w_hh_ref[:, sl],
                          preferred_element_type=jnp.float32)
            # in-step input projection (broadcast mul + add on the VPU)
            return x_t * w_ih_ref[:, sl] + b_ref[:, sl] + rec

        i_g = sigmoid(gate(0))
        f_g = sigmoid(gate(1))
        g_g = jnp.tanh(gate(2))
        o_g = sigmoid(gate(3))
        c_new = f_g * c + i_g * g_g
        h_new = o_g * jnp.tanh(c_new)
        return h_new, c_new

    # Unroll only as deep as the vreg file allows (live set scales with B_tile).
    if B <= 32:
        unroll = True if T <= 16 else 4
    elif B <= 64:
        unroll = 2
    else:
        unroll = 1
    h_final, _ = lax.fori_loop(0, T, step, (h0, c0), unroll=unroll)

    # fc head as a lane reduction (an MXU pass with N=1 would be ~all waste).
    risk = jnp.sum(h_final * fc_w_ref[...], axis=-1, keepdims=True)   # (B, 1)
    # lane-dense store: (B,1) + (1,128) broadcasts to the full (B,128) tile
    out_ref[...] = risk + fc_b_ref[...]


def init_params(key, hidden_size):
    """Deterministic parameter init matching PyTorch LSTM/Linear shapes."""
    H = hidden_size
    k = 1.0 / jnp.sqrt(jnp.float32(H))
    keys = jax.random.split(key, 6)
    weight_ih = jax.random.uniform(keys[0], (4 * H, 1), jnp.float32, -k, k)
    weight_hh = jax.random.uniform(keys[1], (4 * H, H), jnp.float32, -k, k)
    bias_ih = jax.random.uniform(keys[2], (4 * H,), jnp.float32, -k, k)
    bias_hh = jax.random.uniform(keys[3], (4 * H,), jnp.float32, -k, k)
    fc_weight = jax.random.uniform(keys[4], (1, H), jnp.float32, -k, k)
    fc_bias = jax.random.uniform(keys[5], (1,), jnp.float32, -k, k)
    return dict(weight_ih=weight_ih, weight_hh=weight_hh,
                bias_ih=bias_ih, bias_hh=bias_hh,
                fc_weight=fc_weight, fc_bias=fc_bias)


@functools.partial(jax.jit, static_argnames=("matmul_dtype",))
def lstm_survival(x, params, matmul_dtype=jnp.float32):
    """x: (B, T) float32 -> risk: (B,) float32"""
    x = x.astype(jnp.float32)
    B, T = x.shape
    H = params["weight_hh"].shape[1]

    # --- padding / tiling choices -----------------------------------------
    H_pad = _round_up(H, 128)            # each gate is a whole 128-lane vreg
    B_pad = _round_up(max(B, 8), 8)      # f32 sublane granularity
    if B_pad < 16:
        B_tile = B_pad                   # too small to split usefully
    elif B_pad <= 256:
        # force >= 2 batch tiles so the "parallel" grid axis actually shards
        # work across both TensorCores on v7x.
        B_tile = _round_up((B_pad + 1) // 2, 8)
        B_pad = 2 * B_tile
    else:
        B_tile = 128
        B_pad = _round_up(B_pad, B_tile)
    n_tiles = B_pad // B_tile

    # --- per-gate zero-padding of the weights (gate order i,f,g,o) --------
    # Padded lanes see gates == 0 => i=f=o=0.5, g=0 => h,c stay exactly 0,
    # so padding never contaminates the valid lanes.
    w_ih = params["weight_ih"].reshape(4, H)                       # (4, H)
    w_ih_row = (jnp.zeros((4, H_pad), jnp.float32).at[:, :H].set(w_ih)
                .reshape(1, 4 * H_pad))                            # (1, 4H_pad)

    w_hh = params["weight_hh"].reshape(4, H, H)                    # (gate,out,in)
    w_hh_p = jnp.zeros((4, H_pad, H_pad), jnp.float32).at[:, :H, :H].set(w_hh)
    w_hh_k = (jnp.transpose(w_hh_p, (2, 0, 1))
              .reshape(H_pad, 4 * H_pad).astype(matmul_dtype))     # (H_pad, 4H_pad)

    b = (params["bias_ih"] + params["bias_hh"]).reshape(4, H)
    b_row = (jnp.zeros((4, H_pad), jnp.float32).at[:, :H].set(b)
             .reshape(1, 4 * H_pad))                               # (1, 4H_pad)

    fc_w_p = jnp.zeros((1, H_pad), jnp.float32).at[:, :H].set(params["fc_weight"])
    fc_b_v = jnp.full((1, 128), params["fc_bias"][0], jnp.float32)

    # --- time-major raw input (NO precomputed projection slab) ------------
    x_tm = jnp.zeros((T, B_pad, 1), jnp.float32).at[:, :B, 0].set(x.T)
    # TODO(synk): for very long T, add a time-chunk grid axis (h/c carried in
    # VMEM scratch) so the lane-padded x block stays small in VMEM.

    # --- VMEM budget / cost hints ------------------------------------------
    itemsize = jnp.dtype(matmul_dtype).itemsize
    block_bytes = (T * B_tile * 128 * 4            # x block (lane-padded last dim)
                   + H_pad * 4 * H_pad * itemsize  # w_hh
                   + 2 * 8 * 4 * H_pad * 4         # w_ih_row + b_row (sublane pad)
                   + 8 * H_pad * 4 + 8 * 128 * 4   # fc_w, fc_b
                   + B_tile * 128 * 4)             # out block
    vmem_limit = min(64 << 20, max(32 << 20, 4 * block_bytes))

    cost = pl.CostEstimate(
        flops=n_tiles * T * (2 * B_tile * H_pad * 4 * H_pad
                             + 10 * B_tile * 4 * H_pad),
        transcendentals=n_tiles * T * B_tile * 5 * H_pad,
        bytes_accessed=(x_tm.size * 4 + H_pad * 4 * H_pad * itemsize
                        + 10 * 4 * H_pad * 4 + B_pad * 128 * 4),
    )

    out = pl.pallas_call(
        functools.partial(lstm_survival_kernel, matmul_dtype=matmul_dtype),
        out_shape=jax.ShapeDtypeStruct((B_pad, 128), jnp.float32),
        grid=(n_tiles,),
        in_specs=[
            pl.BlockSpec((T, B_tile, 1), lambda i: (0, i, 0)),
            pl.BlockSpec((1, 4 * H_pad), lambda i: (0, 0)),
            pl.BlockSpec((1, 4 * H_pad), lambda i: (0, 0)),
            pl.BlockSpec((H_pad, 4 * H_pad), lambda i: (0, 0)),
            pl.BlockSpec((1, H_pad), lambda i: (0, 0)),
            pl.BlockSpec((1, 128), lambda i: (0, 0)),
        ],
        out_specs=pl.BlockSpec((B_tile, 128), lambda i: (i, 0)),
        compiler_params=pltpu.CompilerParams(
            dimension_semantics=("parallel",),
            vmem_limit_bytes=vmem_limit),
        cost_estimate=cost,
    )(x_tm, w_ih_row, b_row, w_hh_k, fc_w_p, fc_b_v)

    return out[:B, 0]


def lstm_survival_ref(x, params):
    """Pure-JAX reference of the PyTorch forward (for verification)."""
    H = params["weight_hh"].shape[1]
    w_ih = params["weight_ih"].T
    w_hh = params["weight_hh"].T
    b = params["bias_ih"] + params["bias_hh"]

    def step(carry, x_t):
        h, c = carry
        gates = x_t[:, None] * w_ih + h @ w_hh + b
        i_g = jax.nn.sigmoid(gates[:, 0 * H:1 * H])
        f_g = jax.nn.sigmoid(gates[:, 1 * H:2 * H])
        g_g = jnp.tanh(gates[:, 2 * H:3 * H])
        o_g = jax.nn.sigmoid(gates[:, 3 * H:4 * H])
        c_new = f_g * c + i_g * g_g
        h_new = o_g * jnp.tanh(c_new)
        return (h_new, c_new), None

    B = x.shape[0]
    h0 = jnp.zeros((B, H), jnp.float32)
    c0 = jnp.zeros((B, H), jnp.float32)
    (h_final, _), _ = lax.scan(step, (h0, c0), x.T)
    risk = h_final @ params["fc_weight"].T + params["fc_bias"]
    return risk[:, 0]


if __name__ == "__main__":
    B, T, H = 2, 8, 64

    key = jax.random.PRNGKey(0)
    kx, kp = jax.random.split(key)
    x = jax.random.normal(kx, (B, T), jnp.float32)
    params = init_params(kp, H)

    risk_ref = lstm_survival_ref(x, params)

    # f32 recurrent matmul: tight tolerance
    risk = jax.block_until_ready(lstm_survival(x, params))
    assert risk.shape == (B,)
    assert jnp.allclose(risk, risk_ref, atol=2e-5, rtol=2e-5), (risk, risk_ref)

    # bf16 MXU operands (secondary perf lever): looser, T-compounded tolerance
    risk_bf16 = jax.block_until_ready(
        lstm_survival(x, params, matmul_dtype=jnp.bfloat16))
    assert jnp.allclose(risk_bf16, risk_ref, atol=3e-2, rtol=3e-2), (
        risk_bf16, risk_ref)

    print("KERNEL_OK")
</pallas_src>

<mosaic_0001>
module attributes {stable_mosaic.version = 11 : i64} {
  func.func @lstm_survival_kernel(%arg0: i32, %arg1: memref<8x8x1xf32, #tpu.memory_space<vmem>>, %arg2: memref<1x512xf32, #tpu.memory_space<vmem>>, %arg3: memref<1x512xf32, #tpu.memory_space<vmem>>, %arg4: memref<128x512xf32, #tpu.memory_space<vmem>>, %arg5: memref<1x128xf32, #tpu.memory_space<vmem>>, %arg6: memref<1x128xf32, #tpu.memory_space<vmem>>, %arg7: memref<8x128xf32, #tpu.memory_space<vmem>>) attributes {dimension_semantics = [#tpu.dimension_semantics<parallel>], iteration_bounds = array<i64: 1>, scalar_prefetch = 0 : i64, scratch_operands = 0 : i64, tpu.core_type = #tpu.core_type<tc>, window_params = [{transform_indices = @transform_0, window_bounds = array<i64: 8, 8, 1>}, {pipeline_mode = #tpu.pipeline_mode<synchronous>, transform_indices = @transform_1, window_bounds = array<i64: 1, 512>}, {pipeline_mode = #tpu.pipeline_mode<synchronous>, transform_indices = @transform_2, window_bounds = array<i64: 1, 512>}, {pipeline_mode = #tpu.pipeline_mode<synchronous>, transform_indices = @transform_3, window_bounds = array<i64: 128, 512>}, {pipeline_mode = #tpu.pipeline_mode<synchronous>, transform_indices = @transform_4, window_bounds = array<i64: 1, 128>}, {pipeline_mode = #tpu.pipeline_mode<synchronous>, transform_indices = @transform_5, window_bounds = array<i64: 1, 128>}, {transform_indices = @transform_6, window_bounds = array<i64: 8, 128>}]} {
    %cst = arith.constant 0.000000e+00 : f32
    %0 = vector.broadcast %cst : f32 to vector<8x128xf32>
    %cst_0 = arith.constant 0.000000e+00 : f32
    %1 = vector.broadcast %cst_0 : f32 to vector<8x128xf32>
    %c0_i32 = arith.constant 0 : i32
    %2 = arith.index_cast %c0_i32 : i32 to index
    %c0 = arith.constant 0 : index
    %c0_1 = arith.constant 0 : index
    %3 = vector.load %arg1[%2, %c0, %c0_1] : memref<8x8x1xf32, #tpu.memory_space<vmem>>, vector<1x8x1xf32>
    %4 = vector.shape_cast %3 : vector<1x8x1xf32> to vector<8x1xf32>
    %c0_2 = arith.constant 0 : index
    %c0_3 = arith.constant 0 : index
    %5 = vector.load %arg4[%c0_2, %c0_3] : memref<128x512xf32, #tpu.memory_space<vmem>>, vector<128x128xf32>
    %cst_4 = arith.constant dense<0.000000e+00> : vector<8x128xf32>
    %6 = tpu.matmul %0, %5, %cst_4 {dimension_numbers = #tpu.dot_dimension_numbers<[1], [0], [0], [1], [0, 0, 1, 1], [], []>} : vector<8x128xf32>, vector<128x128xf32>, vector<8x128xf32> -> vector<8x128xf32>
    %c0_5 = arith.constant 0 : index
    %c0_6 = arith.constant 0 : index
    %7 = vector.load %arg2[%c0_5, %c0_6] : memref<1x512xf32, #tpu.memory_space<vmem>>, vector<1x128xf32>
    %8 = vector.broadcast %4 : vector<8x1xf32> to vector<8x128xf32>
    %9 = vector.broadcast %7 : vector<1x128xf32> to vector<8x128xf32>
    %10 = arith.mulf %8, %9 : vector<8x128xf32>
    %c0_7 = arith.constant 0 : index
    %c0_8 = arith.constant 0 : index
    %11 = vector.load %arg3[%c0_7, %c0_8] : memref<1x512xf32, #tpu.memory_space<vmem>>, vector<1x128xf32>
    %12 = vector.broadcast %11 : vector<1x128xf32> to vector<8x128xf32>
    %13 = arith.addf %10, %12 : vector<8x128xf32>
    %14 = arith.addf %13, %6 : vector<8x128xf32>
    %cst_9 = arith.constant 5.000000e-01 : f32
    %15 = vector.broadcast %cst_9 : f32 to vector<8x128xf32>
    %16 = arith.mulf %15, %14 : vector<8x128xf32>
    %17 = math.tanh %16 : vector<8x128xf32>
    %cst_10 = arith.constant 1.000000e+00 : f32
    %18 = vector.broadcast %cst_10 : f32 to vector<8x128xf32>
    %19 = arith.addf %17, %18 : vector<8x128xf32>
    %cst_11 = arith.constant 5.000000e-01 : f32
    %20 = vector.broadcast %cst_11 : f32 to vector<8x128xf32>
    %21 = arith.mulf %20, %19 : vector<8x128xf32>
    %c0_12 = arith.constant 0 : index
    %c128 = arith.constant 128 : index
    %22 = vector.load %arg4[%c0_12, %c128] : memref<128x512xf32, #tpu.memory_space<vmem>>, vector<128x128xf32>
    %cst_13 = arith.constant dense<0.000000e+00> : vector<8x128xf32>
    %23 = tpu.matmul %0, %22, %cst_13 {dimension_numbers = #tpu.dot_dimension_numbers<[1], [0], [0], [1], [0, 0, 1, 1], [], []>} : vector<8x128xf32>, vector<128x128xf32>, vector<8x128xf32> -> vector<8x128xf32>
    %c0_14 = arith.constant 0 : index
    %c128_15 = arith.constant 128 : index
    %24 = vector.load %arg2[%c0_14, %c128_15] : memref<1x512xf32, #tpu.memory_space<vmem>>, vector<1x128xf32>
    %25 = vector.broadcast %4 : vector<8x1xf32> to vector<8x128xf32>
    %26 = vector.broadcast %24 : vector<1x128xf32> to vector<8x128xf32>
    %27 = arith.mulf %25, %26 : vector<8x128xf32>
    %c0_16 = arith.constant 0 : index
    %c128_17 = arith.constant 128 : index
    %28 = vector.load %arg3[%c0_16, %c128_17] : memref<1x512xf32, #tpu.memory_space<vmem>>, vector<1x128xf32>
    %29 = vector.broadcast %28 : vector<1x128xf32> to vector<8x128xf32>
    %30 = arith.addf %27, %29 : vector<8x128xf32>
    %31 = arith.addf %30, %23 : vector<8x128xf32>
    %cst_18 = arith.constant 5.000000e-01 : f32
    %32 = vector.broadcast %cst_18 : f32 to vector<8x128xf32>
    %33 = arith.mulf %32, %31 : vector<8x128xf32>
    %34 = math.tanh %33 : vector<8x128xf32>
    %cst_19 = arith.constant 1.000000e+00 : f32
    %35 = vector.broadcast %cst_19 : f32 to vector<8x128xf32>
    %36 = arith.addf %34, %35 : vector<8x128xf32>
    %cst_20 = arith.constant 5.000000e-01 : f32
    %37 = vector.broadcast %cst_20 : f32 to vector<8x128xf32>
    %38 = arith.mulf %37, %36 : vector<8x128xf32>
    %c0_21 = arith.constant 0 : index
    %c256 = arith.constant 256 : index
    %39 = vector.load %arg4[%c0_21, %c256] : memref<128x512xf32, #tpu.memory_space<vmem>>, vector<128x128xf32>
    %cst_22 = arith.constant dense<0.000000e+00> : vector<8x128xf32>
    %40 = tpu.matmul %0, %39, %cst_22 {dimension_numbers = #tpu.dot_dimension_numbers<[1], [0], [0], [1], [0, 0, 1, 1], [], []>} : vector<8x128xf32>, vector<128x128xf32>, vector<8x128xf32> -> vector<8x128xf32>
    %c0_23 = arith.constant 0 : index
    %c256_24 = arith.constant 256 : index
    %41 = vector.load %arg2[%c0_23, %c256_24] : memref<1x512xf32, #tpu.memory_space<vmem>>, vector<1x128xf32>
    %42 = vector.broadcast %4 : vector<8x1xf32> to vector<8x128xf32>
    %43 = vector.broadcast %41 : vector<1x128xf32> to vector<8x128xf32>
    %44 = arith.mulf %42, %43 : vector<8x128xf32>
    %c0_25 = arith.constant 0 : index
    %c256_26 = arith.constant 256 : index
    %45 = vector.load %arg3[%c0_25, %c256_26] : memref<1x512xf32, #tpu.memory_space<vmem>>, vector<1x128xf32>
    %46 = vector.broadcast %45 : vector<1x128xf32> to vector<8x128xf32>
    %47 = arith.addf %44, %46 : vector<8x128xf32>
    %48 = arith.addf %47, %40 : vector<8x128xf32>
    %49 = math.tanh %48 : vector<8x128xf32>
    %c0_27 = arith.constant 0 : index
    %c384 = arith.constant 384 : index
    %50 = vector.load %arg4[%c0_27, %c384] : memref<128x512xf32, #tpu.memory_space<vmem>>, vector<128x128xf32>
    %cst_28 = arith.constant dense<0.000000e+00> : vector<8x128xf32>
    %51 = tpu.matmul %0, %50, %cst_28 {dimension_numbers = #tpu.dot_dimension_numbers<[1], [0], [0], [1], [0, 0, 1, 1], [], []>} : vector<8x128xf32>, vector<128x128xf32>, vector<8x128xf32> -> vector<8x128xf32>
    %c0_29 = arith.constant 0 : index
    %c384_30 = arith.constant 384 : index
    %52 = vector.load %arg2[%c0_29, %c384_30] : memref<1x512xf32, #tpu.memory_space<vmem>>, vector<1x128xf32>
    %53 = vector.broadcast %4 : vector<8x1xf32> to vector<8x128xf32>
    %54 = vector.broadcast %52 : vector<1x128xf32> to vector<8x128xf32>
    %55 = arith.mulf %53, %54 : vector<8x128xf32>
    %c0_31 = arith.constant 0 : index
    %c384_32 = arith.constant 384 : index
    %56 = vector.load %arg3[%c0_31, %c384_32] : memref<1x512xf32, #tpu.memory_space<vmem>>, vector<1x128xf32>
    %57 = vector.broadcast %56 : vector<1x128xf32> to vector<8x128xf32>
    %58 = arith.addf %55, %57 : vector<8x128xf32>
    %59 = arith.addf %58, %51 : vector<8x128xf32>
    %cst_33 = arith.constant 5.000000e-01 : f32
    %60 = vector.broadcast %cst_33 : f32 to vector<8x128xf32>
    %61 = arith.mulf %60, %59 : vector<8x128xf32>
    %62 = math.tanh %61 : vector<8x128xf32>
    %cst_34 = arith.constant 1.000000e+00 : f32
    %63 = vector.broadcast %cst_34 : f32 to vector<8x128xf32>
    %64 = arith.addf %62, %63 : vector<8x128xf32>
    %cst_35 = arith.constant 5.000000e-01 : f32
    %65 = vector.broadcast %cst_35 : f32 to vector<8x128xf32>
    %66 = arith.mulf %65, %64 : vector<8x128xf32>
    %67 = arith.mulf %38, %1 : vector<8x128xf32>
    %68 = arith.mulf %21, %49 : vector<8x128xf32>
    %69 = arith.addf %67, %68 : vector<8x128xf32>
    %70 = math.tanh %69 : vector<8x128xf32>
    %71 = arith.mulf %66, %70 : vector<8x128xf32>
    %c1_i32 = arith.constant 1 : i32
    %72 = arith.index_cast %c1_i32 : i32 to index
    %c0_36 = arith.constant 0 : index
    %c0_37 = arith.constant 0 : index
    %73 = vector.load %arg1[%72, %c0_36, %c0_37] : memref<8x8x1xf32, #tpu.memory_space<vmem>>, vector<1x8x1xf32>
    %74 = vector.shape_cast %73 : vector<1x8x1xf32> to vector<8x1xf32>
    %c0_38 = arith.constant 0 : index
    %c0_39 = arith.constant 0 : index
    %75 = vector.load %arg4[%c0_38, %c0_39] : memref<128x512xf32, #tpu.memory_space<vmem>>, vector<128x128xf32>
    %cst_40 = arith.constant dense<0.000000e+00> : vector<8x128xf32>
    %76 = tpu.matmul %71, %75, %cst_40 {dimension_numbers = #tpu.dot_dimension_numbers<[1], [0], [0], [1], [0, 0, 1, 1], [], []>} : vector<8x128xf32>, vector<128x128xf32>, vector<8x128xf32> -> vector<8x128xf32>
    %c0_41 = arith.constant 0 : index
    %c0_42 = arith.constant 0 : index
    %77 = vector.load %arg2[%c0_41, %c0_42] : memref<1x512xf32, #tpu.memory_space<vmem>>, vector<1x128xf32>
    %78 = vector.broadcast %74 : vector<8x1xf32> to vector<8x128xf32>
    %79 = vector.broadcast %77 : vector<1x128xf32> to vector<8x128xf32>
    %80 = arith.mulf %78, %79 : vector<8x128xf32>
    %c0_43 = arith.constant 0 : index
    %c0_44 = arith.constant 0 : index
    %81 = vector.load %arg3[%c0_43, %c0_44] : memref<1x512xf32, #tpu.memory_space<vmem>>, vector<1x128xf32>
    %82 = vector.broadcast %81 : vector<1x128xf32> to vector<8x128xf32>
    %83 = arith.addf %80, %82 : vector<8x128xf32>
    %84 = arith.addf %83, %76 : vector<8x128xf32>
    %cst_45 = arith.constant 5.000000e-01 : f32
    %85 = vector.broadcast %cst_45 : f32 to vector<8x128xf32>
    %86 = arith.mulf %85, %84 : vector<8x128xf32>
    %87 = math.tanh %86 : vector<8x128xf32>
    %cst_46 = arith.constant 1.000000e+00 : f32
    %88 = vector.broadcast %cst_46 : f32 to vector<8x128xf32>
    %89 = arith.addf %87, %88 : vector<8x128xf32>
    %cst_47 = arith.constant 5.000000e-01 : f32
    %90 = vector.broadcast %cst_47 : f32 to vector<8x128xf32>
    %91 = arith.mulf %90, %89 : vector<8x128xf32>
    %c0_48 = arith.constant 0 : index
    %c128_49 = arith.constant 128 : index
    %92 = vector.load %arg4[%c0_48, %c128_49] : memref<128x512xf32, #tpu.memory_space<vmem>>, vector<128x128xf32>
    %cst_50 = arith.constant dense<0.000000e+00> : vector<8x128xf32>
    %93 = tpu.matmul %71, %92, %cst_50 {dimension_numbers = #tpu.dot_dimension_numbers<[1], [0], [0], [1], [0, 0, 1, 1], [], []>} : vector<8x128xf32>, vector<128x128xf32>, vector<8x128xf32> -> vector<8x128xf32>
    %c0_51 = arith.constant 0 : index
    %c128_52 = arith.constant 128 : index
    %94 = vector.load %arg2[%c0_51, %c128_52] : memref<1x512xf32, #tpu.memory_space<vmem>>, vector<1x128xf32>
    %95 = vector.broadcast %74 : vector<8x1xf32> to vector<8x128xf32>
    %96 = vector.broadcast %94 : vector<1x128xf32> to vector<8x128xf32>
    %97 = arith.mulf %95, %96 : vector<8x128xf32>
    %c0_53 = arith.constant 0 : index
    %c128_54 = arith.constant 128 : index
    %98 = vector.load %arg3[%c0_53, %c128_54] : memref<1x512xf32, #tpu.memory_space<vmem>>, vector<1x128xf32>
    %99 = vector.broadcast %98 : vector<1x128xf32> to vector<8x128xf32>
    %100 = arith.addf %97, %99 : vector<8x128xf32>
    %101 = arith.addf %100, %93 : vector<8x128xf32>
    %cst_55 = arith.constant 5.000000e-01 : f32
    %102 = vector.broadcast %cst_55 : f32 to vector<8x128xf32>
    %103 = arith.mulf %102, %101 : vector<8x128xf32>
    %104 = math.tanh %103 : vector<8x128xf32>
    %cst_56 = arith.constant 1.000000e+00 : f32
    %105 = vector.broadcast %cst_56 : f32 to vector<8x128xf32>
    %106 = arith.addf %104, %105 : vector<8x128xf32>
    %cst_57 = arith.constant 5.000000e-01 : f32
    %107 = vector.broadcast %cst_57 : f32 to vector<8x128xf32>
    %108 = arith.mulf %107, %106 : vector<8x128xf32>
    %c0_58 = arith.constant 0 : index
    %c256_59 = arith.constant 256 : index
    %109 = vector.load %arg4[%c0_58, %c256_59] : memref<128x512xf32, #tpu.memory_space<vmem>>, vector<128x128xf32>
    %cst_60 = arith.constant dense<0.000000e+00> : vector<8x128xf32>
    %110 = tpu.matmul %71, %109, %cst_60 {dimension_numbers = #tpu.dot_dimension_numbers<[1], [0], [0], [1], [0, 0, 1, 1], [], []>} : vector<8x128xf32>, vector<128x128xf32>, vector<8x128xf32> -> vector<8x128xf32>
    %c0_61 = arith.constant 0 : index
    %c256_62 = arith.constant 256 : index
    %111 = vector.load %arg2[%c0_61, %c256_62] : memref<1x512xf32, #tpu.memory_space<vmem>>, vector<1x128xf32>
    %112 = vector.broadcast %74 : vector<8x1xf32> to vector<8x128xf32>
    %113 = vector.broadcast %111 : vector<1x128xf32> to vector<8x128xf32>
    %114 = arith.mulf %112, %113 : vector<8x128xf32>
    %c0_63 = arith.constant 0 : index
    %c256_64 = arith.constant 256 : index
    %115 = vector.load %arg3[%c0_63, %c256_64] : memref<1x512xf32, #tpu.memory_space<vmem>>, vector<1x128xf32>
    %116 = vector.broadcast %115 : vector<1x128xf32> to vector<8x128xf32>
    %117 = arith.addf %114, %116 : vector<8x128xf32>
    %118 = arith.addf %117, %110 : vector<8x128xf32>
    %119 = math.tanh %118 : vector<8x128xf32>
    %c0_65 = arith.constant 0 : index
    %c384_66 = arith.constant 384 : index
    %120 = vector.load %arg4[%c0_65, %c384_66] : memref<128x512xf32, #tpu.memory_space<vmem>>, vector<128x128xf32>
    %cst_67 = arith.constant dense<0.000000e+00> : vector<8x128xf32>
    %121 = tpu.matmul %71, %120, %cst_67 {dimension_numbers = #tpu.dot_dimension_numbers<[1], [0], [0], [1], [0, 0, 1, 1], [], []>} : vector<8x128xf32>, vector<128x128xf32>, vector<8x128xf32> -> vector<8x128xf32>
    %c0_68 = arith.constant 0 : index
    %c384_69 = arith.constant 384 : index
    %122 = vector.load %arg2[%c0_68, %c384_69] : memref<1x512xf32, #tpu.memory_space<vmem>>, vector<1x128xf32>
    %123 = vector.broadcast %74 : vector<8x1xf32> to vector<8x128xf32>
    %124 = vector.broadcast %122 : vector<1x128xf32> to vector<8x128xf32>
    %125 = arith.mulf %123, %124 : vector<8x128xf32>
    %c0_70 = arith.constant 0 : index
    %c384_71 = arith.constant 384 : index
    %126 = vector.load %arg3[%c0_70, %c384_71] : memref<1x512xf32, #tpu.memory_space<vmem>>, vector<1x128xf32>
    %127 = vector.broadcast %126 : vector<1x128xf32> to vector<8x128xf32>
    %128 = arith.addf %125, %127 : vector<8x128xf32>
    %129 = arith.addf %128, %121 : vector<8x128xf32>
    %cst_72 = arith.constant 5.000000e-01 : f32
    %130 = vector.broadcast %cst_72 : f32 to vector<8x128xf32>
    %131 = arith.mulf %130, %129 : vector<8x128xf32>
    %132 = math.tanh %131 : vector<8x128xf32>
    %cst_73 = arith.constant 1.000000e+00 : f32
    %133 = vector.broadcast %cst_73 : f32 to vector<8x128xf32>
    %134 = arith.addf %132, %133 : vector<8x128xf32>
    %cst_74 = arith.constant 5.000000e-01 : f32
    %135 = vector.broadcast %cst_74 : f32 to vector<8x128xf32>
    %136 = arith.mulf %135, %134 : vector<8x128xf32>
    %137 = arith.mulf %108, %69 : vector<8x128xf32>
    %138 = arith.mulf %91, %119 : vector<8x128xf32>
    %139 = arith.addf %137, %138 : vector<8x128xf32>
    %140 = math.tanh %139 : vector<8x128xf32>
    %141 = arith.mulf %136, %140 : vector<8x128xf32>
    %c2_i32 = arith.constant 2 : i32
    %142 = arith.index_cast %c2_i32 : i32 to index
    %c0_75 = arith.constant 0 : index
    %c0_76 = arith.constant 0 : index
    %143 = vector.load %arg1[%142, %c0_75, %c0_76] : memref<8x8x1xf32, #tpu.memory_space<vmem>>, vector<1x8x1xf32>
    %144 = vector.shape_cast %143 : vector<1x8x1xf32> to vector<8x1xf32>
    %c0_77 = arith.constant 0 : index
    %c0_78 = arith.constant 0 : index
    %145 = vector.load %arg4[%c0_77, %c0_78] : memref<128x512xf32, #tpu.memory_space<vmem>>, vector<128x128xf32>
    %cst_79 = arith.constant dense<0.000000e+00> : vector<8x128xf32>
    %146 = tpu.matmul %141, %145, %cst_79 {dimension_numbers = #tpu.dot_dimension_numbers<[1], [0], [0], [1], [0, 0, 1, 1], [], []>} : vector<8x128xf32>, vector<128x128xf32>, vector<8x128xf32> -> vector<8x128xf32>
    %c0_80 = arith.constant 0 : index
    %c0_81 = arith.constant 0 : index
    %147 = vector.load %arg2[%c0_80, %c0_81] : memref<1x512xf32, #tpu.memory_space<vmem>>, vector<1x128xf32>
    %148 = vector.broadcast %144 : vector<8x1xf32> to vector<8x128xf32>
    %149 = vector.broadcast %147 : vector<1x128xf32> to vector<8x128xf32>
    %150 = arith.mulf %148, %149 : vector<8x128xf32>
    %c0_82 = arith.constant 0 : index
    %c0_83 = arith.constant 0 : index
    %151 = vector.load %arg3[%c0_82, %c0_83] : memref<1x512xf32, #tpu.memory_space<vmem>>, vector<1x128xf32>
    %152 = vector.broadcast %151 : vector<1x128xf32> to vector<8x128xf32>
    %153 = arith.addf %150, %152 : vector<8x128xf32>
    %154 = arith.addf %153, %146 : vector<8x128xf32>
    %cst_84 = arith.constant 5.000000e-01 : f32
    %155 = vector.broadcast %cst_84 : f32 to vector<8x128xf32>
    %156 = arith.mulf %155, %154 : vector<8x128xf32>
    %157 = math.tanh %156 : vector<8x128xf32>
    %cst_85 = arith.constant 1.000000e+00 : f32
    %158 = vector.broadcast %cst_85 : f32 to vector<8x128xf32>
    %159 = arith.addf %157, %158 : vector<8x128xf32>
    %cst_86 = arith.constant 5.000000e-01 : f32
    %160 = vector.broadcast %cst_86 : f32 to vector<8x128xf32>
    %161 = arith.mulf %160, %159 : vector<8x128xf32>
    %c0_87 = arith.constant 0 : index
    %c128_88 = arith.constant 128 : index
    %162 = vector.load %arg4[%c0_87, %c128_88] : memref<128x512xf32, #tpu.memory_space<vmem>>, vector<128x128xf32>
    %cst_89 = arith.constant dense<0.000000e+00> : vector<8x128xf32>
    %163 = tpu.matmul %141, %162, %cst_89 {dimension_numbers = #tpu.dot_dimension_numbers<[1], [0], [0], [1], [0, 0, 1, 1], [], []>} : vector<8x128xf32>, vector<128x128xf32>, vector<8x128xf32> -> vector<8x128xf32>
    %c0_90 = arith.constant 0 : index
    %c128_91 = arith.constant 128 : index
    %164 = vector.load %arg2[%c0_90, %c128_91] : memref<1x512xf32, #tpu.memory_space<vmem>>, vector<1x128xf32>
    %165 = vector.broadcast %144 : vector<8x1xf32> to vector<8x128xf32>
    %166 = vector.broadcast %164 : vector<1x128xf32> to vector<8x128xf32>
    %167 = arith.mulf %165, %166 : vector<8x128xf32>
    %c0_92 = arith.constant 0 : index
    %c128_93 = arith.constant 128 : index
    %168 = vector.load %arg3[%c0_92, %c128_93] : memref<1x512xf32, #tpu.memory_space<vmem>>, vector<1x128xf32>
    %169 = vector.broadcast %168 : vector<1x128xf32> to vector<8x128xf32>
    %170 = arith.addf %167, %169 : vector<8x128xf32>
    %171 = arith.addf %170, %163 : vector<8x128xf32>
    %cst_94 = arith.constant 5.000000e-01 : f32
    %172 = vector.broadcast %cst_94 : f32 to vector<8x128xf32>
    %173 = arith.mulf %172, %171 : vector<8x128xf32>
    %174 = math.tanh %173 : vector<8x128xf32>
    %cst_95 = arith.constant 1.000000e+00 : f32
    %175 = vector.broadcast %cst_95 : f32 to vector<8x128xf32>
    %176 = arith.addf %174, %175 : vector<8x128xf32>
    %cst_96 = arith.constant 5.000000e-01 : f32
    %177 = vector.broadcast %cst_96 : f32 to vector<8x128xf32>
    %178 = arith.mulf %177, %176 : vector<8x128xf32>
    %c0_97 = arith.constant 0 : index
    %c256_98 = arith.constant 256 : index
    %179 = vector.load %arg4[%c0_97, %c256_98] : memref<128x512xf32, #tpu.memory_space<vmem>>, vector<128x128xf32>
    %cst_99 = arith.constant dense<0.000000e+00> : vector<8x128xf32>
    %180 = tpu.matmul %141, %179, %cst_99 {dimension_numbers = #tpu.dot_dimension_numbers<[1], [0], [0], [1], [0, 0, 1, 1], [], []>} : vector<8x128xf32>, vector<128x128xf32>, vector<8x128xf32> -> vector<8x128xf32>
    %c0_100 = arith.constant 0 : index
    %c256_101 = arith.constant 256 : index
    %181 = vector.load %arg2[%c0_100, %c256_101] : memref<1x512xf32, #tpu.memory_space<vmem>>, vector<1x128xf32>
    %182 = vector.broadcast %144 : vector<8x1xf32> to vector<8x128xf32>
    %183 = vector.broadcast %181 : vector<1x128xf32> to vector<8x128xf32>
    %184 = arith.mulf %182, %183 : vector<8x128xf32>
    %c0_102 = arith.constant 0 : index
    %c256_103 = arith.constant 256 : index
    %185 = vector.load %arg3[%c0_102, %c256_103] : memref<1x512xf32, #tpu.memory_space<vmem>>, vector<1x128xf32>
    %186 = vector.broadcast %185 : vector<1x128xf32> to vector<8x128xf32>
    %187 = arith.addf %184, %186 : vector<8x128xf32>
    %188 = arith.addf %187, %180 : vector<8x128xf32>
    %189 = math.tanh %188 : vector<8x128xf32>
    %c0_104 = arith.constant 0 : index
    %c384_105 = arith.constant 384 : index
    %190 = vector.load %arg4[%c0_104, %c384_105] : memref<128x512xf32, #tpu.memory_space<vmem>>, vector<128x128xf32>
    %cst_106 = arith.constant dense<0.000000e+00> : vector<8x128xf32>
    %191 = tpu.matmul %141, %190, %cst_106 {dimension_numbers = #tpu.dot_dimension_numbers<[1], [0], [0], [1], [0, 0, 1, 1], [], []>} : vector<8x128xf32>, vector<128x128xf32>, vector<8x128xf32> -> vector<8x128xf32>
    %c0_107 = arith.constant 0 : index
    %c384_108 = arith.constant 384 : index
    %192 = vector.load %arg2[%c0_107, %c384_108] : memref<1x512xf32, #tpu.memory_space<vmem>>, vector<1x128xf32>
    %193 = vector.broadcast %144 : vector<8x1xf32> to vector<8x128xf32>
    %194 = vector.broadcast %192 : vector<1x128xf32> to vector<8x128xf32>
    %195 = arith.mulf %193, %194 : vector<8x128xf32>
    %c0_109 = arith.constant 0 : index
    %c384_110 = arith.constant 384 : index
    %196 = vector.load %arg3[%c0_109, %c384_110] : memref<1x512xf32, #tpu.memory_space<vmem>>, vector<1x128xf32>
    %197 = vector.broadcast %196 : vector<1x128xf32> to vector<8x128xf32>
    %198 = arith.addf %195, %197 : vector<8x128xf32>
    %199 = arith.addf %198, %191 : vector<8x128xf32>
    %cst_111 = arith.constant 5.000000e-01 : f32
    %200 = vector.broadcast %cst_111 : f32 to vector<8x128xf32>
    %201 = arith.mulf %200, %199 : vector<8x128xf32>
    %202 = math.tanh %201 : vector<8x128xf32>
    %cst_112 = arith.constant 1.000000e+00 : f32
    %203 = vector.broadcast %cst_112 : f32 to vector<8x128xf32>
    %204 = arith.addf %202, %203 : vector<8x128xf32>
    %cst_113 = arith.constant 5.000000e-01 : f32
    %205 = vector.broadcast %cst_113 : f32 to vector<8x128xf32>
    %206 = arith.mulf %205, %204 : vector<8x128xf32>
    %207 = arith.mulf %178, %139 : vector<8x128xf32>
    %208 = arith.mulf %161, %189 : vector<8x128xf32>
    %209 = arith.addf %207, %208 : vector<8x128xf32>
    %210 = math.tanh %209 : vector<8x128xf32>
    %211 = arith.mulf %206, %210 : vector<8x128xf32>
    %c3_i32 = arith.constant 3 : i32
    %212 = arith.index_cast %c3_i32 : i32 to index
    %c0_114 = arith.constant 0 : index
    %c0_115 = arith.constant 0 : index
    %213 = vector.load %arg1[%212, %c0_114, %c0_115] : memref<8x8x1xf32, #tpu.memory_space<vmem>>, vector<1x8x1xf32>
    %214 = vector.shape_cast %213 : vector<1x8x1xf32> to vector<8x1xf32>
    %c0_116 = arith.constant 0 : index
    %c0_117 = arith.constant 0 : index
    %215 = vector.load %arg4[%c0_116, %c0_117] : memref<128x512xf32, #tpu.memory_space<vmem>>, vector<128x128xf32>
    %cst_118 = arith.constant dense<0.000000e+00> : vector<8x128xf32>
    %216 = tpu.matmul %211, %215, %cst_118 {dimension_numbers = #tpu.dot_dimension_numbers<[1], [0], [0], [1], [0, 0, 1, 1], [], []>} : vector<8x128xf32>, vector<128x128xf32>, vector<8x128xf32> -> vector<8x128xf32>
    %c0_119 = arith.constant 0 : index
    %c0_120 = arith.constant 0 : index
    %217 = vector.load %arg2[%c0_119, %c0_120] : memref<1x512xf32, #tpu.memory_space<vmem>>, vector<1x128xf32>
    %218 = vector.broadcast %214 : vector<8x1xf32> to vector<8x128xf32>
    %219 = vector.broadcast %217 : vector<1x128xf32> to vector<8x128xf32>
    %220 = arith.mulf %218, %219 : vector<8x128xf32>
    %c0_121 = arith.constant 0 : index
    %c0_122 = arith.constant 0 : index
    %221 = vector.load %arg3[%c0_121, %c0_122] : memref<1x512xf32, #tpu.memory_space<vmem>>, vector<1x128xf32>
    %222 = vector.broadcast %221 : vector<1x128xf32> to vector<8x128xf32>
    %223 = arith.addf %220, %222 : vector<8x128xf32>
    %224 = arith.addf %223, %216 : vector<8x128xf32>
    %cst_123 = arith.constant 5.000000e-01 : f32
    %225 = vector.broadcast %cst_123 : f32 to vector<8x128xf32>
    %226 = arith.mulf %225, %224 : vector<8x128xf32>
    %227 = math.tanh %226 : vector<8x128xf32>
    %cst_124 = arith.constant 1.000000e+00 : f32
    %228 = vector.broadcast %cst_124 : f32 to vector<8x128xf32>
    %229 = arith.addf %227, %228 : vector<8x128xf32>
    %cst_125 = arith.constant 5.000000e-01 : f32
    %230 = vector.broadcast %cst_125 : f32 to vector<8x128xf32>
    %231 = arith.mulf %230, %229 : vector<8x128xf32>
    %c0_126 = arith.constant 0 : index
    %c128_127 = arith.constant 128 : index
    %232 = vector.load %arg4[%c0_126, %c128_127] : memref<128x512xf32, #tpu.memory_space<vmem>>, vector<128x128xf32>
    %cst_128 = arith.constant dense<0.000000e+00> : vector<8x128xf32>
    %233 = tpu.matmul %211, %232, %cst_128 {dimension_numbers = #tpu.dot_dimension_numbers<[1], [0], [0], [1], [0, 0, 1, 1], [], []>} : vector<8x128xf32>, vector<128x128xf32>, vector<8x128xf32> -> vector<8x128xf32>
    %c0_129 = arith.constant 0 : index
    %c128_130 = arith.constant 128 : index
    %234 = vector.load %arg2[%c0_129, %c128_130] : memref<1x512xf32, #tpu.memory_space<vmem>>, vector<1x128xf32>
    %235 = vector.broadcast %214 : vector<8x1xf32> to vector<8x128xf32>
    %236 = vector.broadcast %234 : vector<1x128xf32> to vector<8x128xf32>
    %237 = arith.mulf %235, %236 : vector<8x128xf32>
    %c0_131 = arith.constant 0 : index
    %c128_132 = arith.constant 128 : index
    %238 = vector.load %arg3[%c0_131, %c128_132] : memref<1x512xf32, #tpu.memory_space<vmem>>, vector<1x128xf32>
    %239 = vector.broadcast %238 : vector<1x128xf32> to vector<8x128xf32>
    %240 = arith.addf %237, %239 : vector<8x128xf32>
    %241 = arith.addf %240, %233 : vector<8x128xf32>
    %cst_133 = arith.constant 5.000000e-01 : f32
    %242 = vector.broadcast %cst_133 : f32 to vector<8x128xf32>
    %243 = arith.mulf %242, %241 : vector<8x128xf32>
    %244 = math.tanh %243 : vector<8x128xf32>
    %cst_134 = arith.constant 1.000000e+00 : f32
    %245 = vector.broadcast %cst_134 : f32 to vector<8x128xf32>
    %246 = arith.addf %244, %245 : vector<8x128xf32>
    %cst_135 = arith.constant 5.000000e-01 : f32
    %247 = vector.broadcast %cst_135 : f32 to vector<8x128xf32>
    %248 = arith.mulf %247, %246 : vector<8x128xf32>
    %c0_136 = arith.constant 0 : index
    %c256_137 = arith.constant 256 : index
    %249 = vector.load %arg4[%c0_136, %c256_137] : memref<128x512xf32, #tpu.memory_space<vmem>>, vector<128x128xf32>
    %cst_138 = arith.constant dense<0.000000e+00> : vector<8x128xf32>
    %250 = tpu.matmul %211, %249, %cst_138 {dimension_numbers = #tpu.dot_dimension_numbers<[1], [0], [0], [1], [0, 0, 1, 1], [], []>} : vector<8x128xf32>, vector<128x128xf32>, vector<8x128xf32> -> vector<8x128xf32>
    %c0_139 = arith.constant 0 : index
    %c256_140 = arith.constant 256 : index
    %251 = vector.load %arg2[%c0_139, %c256_140] : memref<1x512xf32, #tpu.memory_space<vmem>>, vector<1x128xf32>
    %252 = vector.broadcast %214 : vector<8x1xf32> to vector<8x128xf32>
    %253 = vector.broadcast %251 : vector<1x128xf32> to vector<8x128xf32>
    %254 = arith.mulf %252, %253 : vector<8x128xf32>
    %c0_141 = arith.constant 0 : index
    %c256_142 = arith.constant 256 : index
    %255 = vector.load %arg3[%c0_141, %c256_142] : memref<1x512xf32, #tpu.memory_space<vmem>>, vector<1x128xf32>
    %256 = vector.broadcast %255 : vector<1x128xf32> to vector<8x128xf32>
    %257 = arith.addf %254, %256 : vector<8x128xf32>
    %258 = arith.addf %257, %250 : vector<8x128xf32>
    %259 = math.tanh %258 : vector<8x128xf32>
    %c0_143 = arith.constant 0 : index
    %c384_144 = arith.constant 384 : index
    %260 = vector.load %arg4[%c0_143, %c384_144] : memref<128x512xf32, #tpu.memory_space<vmem>>, vector<128x128xf32>
    %cst_145 = arith.constant dense<0.000000e+00> : vector<8x128xf32>
    %261 = tpu.matmul %211, %260, %cst_145 {dimension_numbers = #tpu.dot_dimension_numbers<[1], [0], [0], [1], [0, 0, 1, 1], [], []>} : vector<8x128xf32>, vector<128x128xf32>, vector<8x128xf32> -> vector<8x128xf32>
    %c0_146 = arith.constant 0 : index
    %c384_147 = arith.constant 384 : index
    %262 = vector.load %arg2[%c0_146, %c384_147] : memref<1x512xf32, #tpu.memory_space<vmem>>, vector<1x128xf32>
    %263 = vector.broadcast %214 : vector<8x1xf32> to vector<8x128xf32>
    %264 = vector.broadcast %262 : vector<1x128xf32> to vector<8x128xf32>
    %265 = arith.mulf %263, %264 : vector<8x128xf32>
    %c0_148 = arith.constant 0 : index
    %c384_149 = arith.constant 384 : index
    %266 = vector.load %arg3[%c0_148, %c384_149] : memref<1x512xf32, #tpu.memory_space<vmem>>, vector<1x128xf32>
    %267 = vector.broadcast %266 : vector<1x128xf32> to vector<8x128xf32>
    %268 = arith.addf %265, %267 : vector<8x128xf32>
    %269 = arith.addf %268, %261 : vector<8x128xf32>
    %cst_150 = arith.constant 5.000000e-01 : f32
    %270 = vector.broadcast %cst_150 : f32 to vector<8x128xf32>
    %271 = arith.mulf %270, %269 : vector<8x128xf32>
    %272 = math.tanh %271 : vector<8x128xf32>
    %cst_151 = arith.constant 1.000000e+00 : f32
    %273 = vector.broadcast %cst_151 : f32 to vector<8x128xf32>
    %274 = arith.addf %272, %273 : vector<8x128xf32>
    %cst_152 = arith.constant 5.000000e-01 : f32
    %275 = vector.broadcast %cst_152 : f32 to vector<8x128xf32>
    %276 = arith.mulf %275, %274 : vector<8x128xf32>
    %277 = arith.mulf %248, %209 : vector<8x128xf32>
    %278 = arith.mulf %231, %259 : vector<8x128xf32>
    %279 = arith.addf %277, %278 : vector<8x128xf32>
    %280 = math.tanh %279 : vector<8x128xf32>
    %281 = arith.mulf %276, %280 : vector<8x128xf32>
    %c4_i32 = arith.constant 4 : i32
    %282 = arith.index_cast %c4_i32 : i32 to index
    %c0_153 = arith.constant 0 : index
    %c0_154 = arith.constant 0 : index
    %283 = vector.load %arg1[%282, %c0_153, %c0_154] : memref<8x8x1xf32, #tpu.memory_space<vmem>>, vector<1x8x1xf32>
    %284 = vector.shape_cast %283 : vector<1x8x1xf32> to vector<8x1xf32>
    %c0_155 = arith.constant 0 : index
    %c0_156 = arith.constant 0 : index
    %285 = vector.load %arg4[%c0_155, %c0_156] : memref<128x512xf32, #tpu.memory_space<vmem>>, vector<128x128xf32>
    %cst_157 = arith.constant dense<0.000000e+00> : vector<8x128xf32>
    %286 = tpu.matmul %281, %285, %cst_157 {dimension_numbers = #tpu.dot_dimension_numbers<[1], [0], [0], [1], [0, 0, 1, 1], [], []>} : vector<8x128xf32>, vector<128x128xf32>, vector<8x128xf32> -> vector<8x128xf32>
    %c0_158 = arith.constant 0 : index
    %c0_159 = arith.constant 0 : index
    %287 = vector.load %arg2[%c0_158, %c0_159] : memref<1x512xf32, #tpu.memory_space<vmem>>, vector<1x128xf32>
    %288 = vector.broadcast %284 : vector<8x1xf32> to vector<8x128xf32>
    %289 = vector.broadcast %287 : vector<1x128xf32> to vector<8x128xf32>
    %290 = arith.mulf %288, %289 : vector<8x128xf32>
    %c0_160 = arith.constant 0 : index
    %c0_161 = arith.constant 0 : index
    %291 = vector.load %arg3[%c0_160, %c0_161] : memref<1x512xf32, #tpu.memory_space<vmem>>, vector<1x128xf32>
    %292 = vector.broadcast %291 : vector<1x128xf32> to vector<8x128xf32>
    %293 = arith.addf %290, %292 : vector<8x128xf32>
    %294 = arith.addf %293, %286 : vector<8x128xf32>
    %cst_162 = arith.constant 5.000000e-01 : f32
    %295 = vector.broadcast %cst_162 : f32 to vector<8x128xf32>
    %296 = arith.mulf %295, %294 : vector<8x128xf32>
    %297 = math.tanh %296 : vector<8x128xf32>
    %cst_163 = arith.constant 1.000000e+00 : f32
    %298 = vector.broadcast %cst_163 : f32 to vector<8x128xf32>
    %299 = arith.addf %297, %298 : vector<8x128xf32>
    %cst_164 = arith.constant 5.000000e-01 : f32
    %300 = vector.broadcast %cst_164 : f32 to vector<8x128xf32>
    %301 = arith.mulf %300, %299 : vector<8x128xf32>
    %c0_165 = arith.constant 0 : index
    %c128_166 = arith.constant 128 : index
    %302 = vector.load %arg4[%c0_165, %c128_166] : memref<128x512xf32, #tpu.memory_space<vmem>>, vector<128x128xf32>
    %cst_167 = arith.constant dense<0.000000e+00> : vector<8x128xf32>
    %303 = tpu.matmul %281, %302, %cst_167 {dimension_numbers = #tpu.dot_dimension_numbers<[1], [0], [0], [1], [0, 0, 1, 1], [], []>} : vector<8x128xf32>, vector<128x128xf32>, vector<8x128xf32> -> vector<8x128xf32>
    %c0_168 = arith.constant 0 : index
    %c128_169 = arith.constant 128 : index
    %304 = vector.load %arg2[%c0_168, %c128_169] : memref<1x512xf32, #tpu.memory_space<vmem>>, vector<1x128xf32>
    %305 = vector.broadcast %284 : vector<8x1xf32> to vector<8x128xf32>
    %306 = vector.broadcast %304 : vector<1x128xf32> to vector<8x128xf32>
    %307 = arith.mulf %305, %306 : vector<8x128xf32>
    %c0_170 = arith.constant 0 : index
    %c128_171 = arith.constant 128 : index
    %308 = vector.load %arg3[%c0_170, %c128_171] : memref<1x512xf32, #tpu.memory_space<vmem>>, vector<1x128xf32>
    %309 = vector.broadcast %308 : vector<1x128xf32> to vector<8x128xf32>
    %310 = arith.addf %307, %309 : vector<8x128xf32>
    %311 = arith.addf %310, %303 : vector<8x128xf32>
    %cst_172 = arith.constant 5.000000e-01 : f32
    %312 = vector.broadcast %cst_172 : f32 to vector<8x128xf32>
    %313 = arith.mulf %312, %311 : vector<8x128xf32>
    %314 = math.tanh %313 : vector<8x128xf32>
    %cst_173 = arith.constant 1.000000e+00 : f32
    %315 = vector.broadcast %cst_173 : f32 to vector<8x128xf32>
    %316 = arith.addf %314, %315 : vector<8x128xf32>
    %cst_174 = arith.constant 5.000000e-01 : f32
    %317 = vector.broadcast %cst_174 : f32 to vector<8x128xf32>
    %318 = arith.mulf %317, %316 : vector<8x128xf32>
    %c0_175 = arith.constant 0 : index
    %c256_176 = arith.constant 256 : index
    %319 = vector.load %arg4[%c0_175, %c256_176] : memref<128x512xf32, #tpu.memory_space<vmem>>, vector<128x128xf32>
    %cst_177 = arith.constant dense<0.000000e+00> : vector<8x128xf32>
    %320 = tpu.matmul %281, %319, %cst_177 {dimension_numbers = #tpu.dot_dimension_numbers<[1], [0], [0], [1], [0, 0, 1, 1], [], []>} : vector<8x128xf32>, vector<128x128xf32>, vector<8x128xf32> -> vector<8x128xf32>
    %c0_178 = arith.constant 0 : index
    %c256_179 = arith.constant 256 : index
    %321 = vector.load %arg2[%c0_178, %c256_179] : memref<1x512xf32, #tpu.memory_space<vmem>>, vector<1x128xf32>
    %322 = vector.broadcast %284 : vector<8x1xf32> to vector<8x128xf32>
    %323 = vector.broadcast %321 : vector<1x128xf32> to vector<8x128xf32>
    %324 = arith.mulf %322, %323 : vector<8x128xf32>
    %c0_180 = arith.constant 0 : index
    %c256_181 = arith.constant 256 : index
    %325 = vector.load %arg3[%c0_180, %c256_181] : memref<1x512xf32, #tpu.memory_space<vmem>>, vector<1x128xf32>
    %326 = vector.broadcast %325 : vector<1x128xf32> to vector<8x128xf32>
    %327 = arith.addf %324, %326 : vector<8x128xf32>
    %328 = arith.addf %327, %320 : vector<8x128xf32>
    %329 = math.tanh %328 : vector<8x128xf32>
    %c0_182 = arith.constant 0 : index
    %c384_183 = arith.constant 384 : index
    %330 = vector.load %arg4[%c0_182, %c384_183] : memref<128x512xf32, #tpu.memory_space<vmem>>, vector<128x128xf32>
    %cst_184 = arith.constant dense<0.000000e+00> : vector<8x128xf32>
    %331 = tpu.matmul %281, %330, %cst_184 {dimension_numbers = #tpu.dot_dimension_numbers<[1], [0], [0], [1], [0, 0, 1, 1], [], []>} : vector<8x128xf32>, vector<128x128xf32>, vector<8x128xf32> -> vector<8x128xf32>
    %c0_185 = arith.constant 0 : index
    %c384_186 = arith.constant 384 : index
    %332 = vector.load %arg2[%c0_185, %c384_186] : memref<1x512xf32, #tpu.memory_space<vmem>>, vector<1x128xf32>
    %333 = vector.broadcast %284 : vector<8x1xf32> to vector<8x128xf32>
    %334 = vector.broadcast %332 : vector<1x128xf32> to vector<8x128xf32>
    %335 = arith.mulf %333, %334 : vector<8x128xf32>
    %c0_187 = arith.constant 0 : index
    %c384_188 = arith.constant 384 : index
    %336 = vector.load %arg3[%c0_187, %c384_188] : memref<1x512xf32, #tpu.memory_space<vmem>>, vector<1x128xf32>
    %337 = vector.broadcast %336 : vector<1x128xf32> to vector<8x128xf32>
    %338 = arith.addf %335, %337 : vector<8x128xf32>
    %339 = arith.addf %338, %331 : vector<8x128xf32>
    %cst_189 = arith.constant 5.000000e-01 : f32
    %340 = vector.broadcast %cst_189 : f32 to vector<8x128xf32>
    %341 = arith.mulf %340, %339 : vector<8x128xf32>
    %342 = math.tanh %341 : vector<8x128xf32>
    %cst_190 = arith.constant 1.000000e+00 : f32
    %343 = vector.broadcast %cst_190 : f32 to vector<8x128xf32>
    %344 = arith.addf %342, %343 : vector<8x128xf32>
    %cst_191 = arith.constant 5.000000e-01 : f32
    %345 = vector.broadcast %cst_191 : f32 to vector<8x128xf32>
    %346 = arith.mulf %345, %344 : vector<8x128xf32>
    %347 = arith.mulf %318, %279 : vector<8x128xf32>
    %348 = arith.mulf %301, %329 : vector<8x128xf32>
    %349 = arith.addf %347, %348 : vector<8x128xf32>
    %350 = math.tanh %349 : vector<8x128xf32>
    %351 = arith.mulf %346, %350 : vector<8x128xf32>
    %c5_i32 = arith.constant 5 : i32
    %352 = arith.index_cast %c5_i32 : i32 to index
    %c0_192 = arith.constant 0 : index
    %c0_193 = arith.constant 0 : index
    %353 = vector.load %arg1[%352, %c0_192, %c0_193] : memref<8x8x1xf32, #tpu.memory_space<vmem>>, vector<1x8x1xf32>
    %354 = vector.shape_cast %353 : vector<1x8x1xf32> to vector<8x1xf32>
    %c0_194 = arith.constant 0 : index
    %c0_195 = arith.constant 0 : index
    %355 = vector.load %arg4[%c0_194, %c0_195] : memref<128x512xf32, #tpu.memory_space<vmem>>, vector<128x128xf32>
    %cst_196 = arith.constant dense<0.000000e+00> : vector<8x128xf32>
    %356 = tpu.matmul %351, %355, %cst_196 {dimension_numbers = #tpu.dot_dimension_numbers<[1], [0], [0], [1], [0, 0, 1, 1], [], []>} : vector<8x128xf32>, vector<128x128xf32>, vector<8x128xf32> -> vector<8x128xf32>
    %c0_197 = arith.constant 0 : index
    %c0_198 = arith.constant 0 : index
    %357 = vector.load %arg2[%c0_197, %c0_198] : memref<1x512xf32, #tpu.memory_space<vmem>>, vector<1x128xf32>
    %358 = vector.broadcast %354 : vector<8x1xf32> to vector<8x128xf32>
    %359 = vector.broadcast %357 : vector<1x128xf32> to vector<8x128xf32>
    %360 = arith.mulf %358, %359 : vector<8x128xf32>
    %c0_199 = arith.constant 0 : index
    %c0_200 = arith.constant 0 : index
    %361 = vector.load %arg3[%c0_199, %c0_200] : memref<1x512xf32, #tpu.memory_space<vmem>>, vector<1x128xf32>
    %362 = vector.broadcast %361 : vector<1x128xf32> to vector<8x128xf32>
    %363 = arith.addf %360, %362 : vector<8x128xf32>
    %364 = arith.addf %363, %356 : vector<8x128xf32>
    %cst_201 = arith.constant 5.000000e-01 : f32
    %365 = vector.broadcast %cst_201 : f32 to vector<8x128xf32>
    %366 = arith.mulf %365, %364 : vector<8x128xf32>
    %367 = math.tanh %366 : vector<8x128xf32>
    %cst_202 = arith.constant 1.000000e+00 : f32
    %368 = vector.broadcast %cst_202 : f32 to vector<8x128xf32>
    %369 = arith.addf %367, %368 : vector<8x128xf32>
    %cst_203 = arith.constant 5.000000e-01 : f32
    %370 = vector.broadcast %cst_203 : f32 to vector<8x128xf32>
    %371 = arith.mulf %370, %369 : vector<8x128xf32>
    %c0_204 = arith.constant 0 : index
    %c128_205 = arith.constant 128 : index
    %372 = vector.load %arg4[%c0_204, %c128_205] : memref<128x512xf32, #tpu.memory_space<vmem>>, vector<128x128xf32>
    %cst_206 = arith.constant dense<0.000000e+00> : vector<8x128xf32>
    %373 = tpu.matmul %351, %372, %cst_206 {dimension_numbers = #tpu.dot_dimension_numbers<[1], [0], [0], [1], [0, 0, 1, 1], [], []>} : vector<8x128xf32>, vector<128x128xf32>, vector<8x128xf32> -> vector<8x128xf32>
    %c0_207 = arith.constant 0 : index
    %c128_208 = arith.constant 128 : index
    %374 = vector.load %arg2[%c0_207, %c128_208] : memref<1x512xf32, #tpu.memory_space<vmem>>, vector<1x128xf32>
    %375 = vector.broadcast %354 : vector<8x1xf32> to vector<8x128xf32>
    %376 = vector.broadcast %374 : vector<1x128xf32> to vector<8x128xf32>
    %377 = arith.mulf %375, %376 : vector<8x128xf32>
    %c0_209 = arith.constant 0 : index
    %c128_210 = arith.constant 128 : index
    %378 = vector.load %arg3[%c0_209, %c128_210] : memref<1x512xf32, #tpu.memory_space<vmem>>, vector<1x128xf32>
    %379 = vector.broadcast %378 : vector<1x128xf32> to vector<8x128xf32>
    %380 = arith.addf %377, %379 : vector<8x128xf32>
    %381 = arith.addf %380, %373 : vector<8x128xf32>
    %cst_211 = arith.constant 5.000000e-01 : f32
    %382 = vector.broadcast %cst_211 : f32 to vector<8x128xf32>
    %383 = arith.mulf %382, %381 : vector<8x128xf32>
    %384 = math.tanh %383 : vector<8x128xf32>
    %cst_212 = arith.constant 1.000000e+00 : f32
    %385 = vector.broadcast %cst_212 : f32 to vector<8x128xf32>
    %386 = arith.addf %384, %385 : vector<8x128xf32>
    %cst_213 = arith.constant 5.000000e-01 : f32
    %387 = vector.broadcast %cst_213 : f32 to vector<8x128xf32>
    %388 = arith.mulf %387, %386 : vector<8x128xf32>
    %c0_214 = arith.constant 0 : index
    %c256_215 = arith.constant 256 : index
    %389 = vector.load %arg4[%c0_214, %c256_215] : memref<128x512xf32, #tpu.memory_space<vmem>>, vector<128x128xf32>
    %cst_216 = arith.constant dense<0.000000e+00> : vector<8x128xf32>
    %390 = tpu.matmul %351, %389, %cst_216 {dimension_numbers = #tpu.dot_dimension_numbers<[1], [0], [0], [1], [0, 0, 1, 1], [], []>} : vector<8x128xf32>, vector<128x128xf32>, vector<8x128xf32> -> vector<8x128xf32>
    %c0_217 = arith.constant 0 : index
    %c256_218 = arith.constant 256 : index
    %391 = vector.load %arg2[%c0_217, %c256_218] : memref<1x512xf32, #tpu.memory_space<vmem>>, vector<1x128xf32>
    %392 = vector.broadcast %354 : vector<8x1xf32> to vector<8x128xf32>
    %393 = vector.broadcast %391 : vector<1x128xf32> to vector<8x128xf32>
    %394 = arith.mulf %392, %393 : vector<8x128xf32>
    %c0_219 = arith.constant 0 : index
    %c256_220 = arith.constant 256 : index
    %395 = vector.load %arg3[%c0_219, %c256_220] : memref<1x512xf32, #tpu.memory_space<vmem>>, vector<1x128xf32>
    %396 = vector.broadcast %395 : vector<1x128xf32> to vector<8x128xf32>
    %397 = arith.addf %394, %396 : vector<8x128xf32>
    %398 = arith.addf %397, %390 : vector<8x128xf32>
    %399 = math.tanh %398 : vector<8x128xf32>
    %c0_221 = arith.constant 0 : index
    %c384_222 = arith.constant 384 : index
    %400 = vector.load %arg4[%c0_221, %c384_222] : memref<128x512xf32, #tpu.memory_space<vmem>>, vector<128x128xf32>
    %cst_223 = arith.constant dense<0.000000e+00> : vector<8x128xf32>
    %401 = tpu.matmul %351, %400, %cst_223 {dimension_numbers = #tpu.dot_dimension_numbers<[1], [0], [0], [1], [0, 0, 1, 1], [], []>} : vector<8x128xf32>, vector<128x128xf32>, vector<8x128xf32> -> vector<8x128xf32>
    %c0_224 = arith.constant 0 : index
    %c384_225 = arith.constant 384 : index
    %402 = vector.load %arg2[%c0_224, %c384_225] : memref<1x512xf32, #tpu.memory_space<vmem>>, vector<1x128xf32>
    %403 = vector.broadcast %354 : vector<8x1xf32> to vector<8x128xf32>
    %404 = vector.broadcast %402 : vector<1x128xf32> to vector<8x128xf32>
    %405 = arith.mulf %403, %404 : vector<8x128xf32>
    %c0_226 = arith.constant 0 : index
    %c384_227 = arith.constant 384 : index
    %406 = vector.load %arg3[%c0_226, %c384_227] : memref<1x512xf32, #tpu.memory_space<vmem>>, vector<1x128xf32>
    %407 = vector.broadcast %406 : vector<1x128xf32> to vector<8x128xf32>
    %408 = arith.addf %405, %407 : vector<8x128xf32>
    %409 = arith.addf %408, %401 : vector<8x128xf32>
    %cst_228 = arith.constant 5.000000e-01 : f32
    %410 = vector.broadcast %cst_228 : f32 to vector<8x128xf32>
    %411 = arith.mulf %410, %409 : vector<8x128xf32>
    %412 = math.tanh %411 : vector<8x128xf32>
    %cst_229 = arith.constant 1.000000e+00 : f32
    %413 = vector.broadcast %cst_229 : f32 to vector<8x128xf32>
    %414 = arith.addf %412, %413 : vector<8x128xf32>
    %cst_230 = arith.constant 5.000000e-01 : f32
    %415 = vector.broadcast %cst_230 : f32 to vector<8x128xf32>
    %416 = arith.mulf %415, %414 : vector<8x128xf32>
    %417 = arith.mulf %388, %349 : vector<8x128xf32>
    %418 = arith.mulf %371, %399 : vector<8x128xf32>
    %419 = arith.addf %417, %418 : vector<8x128xf32>
    %420 = math.tanh %419 : vector<8x128xf32>
    %421 = arith.mulf %416, %420 : vector<8x128xf32>
    %c6_i32 = arith.constant 6 : i32
    %422 = arith.index_cast %c6_i32 : i32 to index
    %c0_231 = arith.constant 0 : index
    %c0_232 = arith.constant 0 : index
    %423 = vector.load %arg1[%422, %c0_231, %c0_232] : memref<8x8x1xf32, #tpu.memory_space<vmem>>, vector<1x8x1xf32>
    %424 = vector.shape_cast %423 : vector<1x8x1xf32> to vector<8x1xf32>
    %c0_233 = arith.constant 0 : index
    %c0_234 = arith.constant 0 : index
    %425 = vector.load %arg4[%c0_233, %c0_234] : memref<128x512xf32, #tpu.memory_space<vmem>>, vector<128x128xf32>
    %cst_235 = arith.constant dense<0.000000e+00> : vector<8x128xf32>
    %426 = tpu.matmul %421, %425, %cst_235 {dimension_numbers = #tpu.dot_dimension_numbers<[1], [0], [0], [1], [0, 0, 1, 1], [], []>} : vector<8x128xf32>, vector<128x128xf32>, vector<8x128xf32> -> vector<8x128xf32>
    %c0_236 = arith.constant 0 : index
    %c0_237 = arith.constant 0 : index
    %427 = vector.load %arg2[%c0_236, %c0_237] : memref<1x512xf32, #tpu.memory_space<vmem>>, vector<1x128xf32>
    %428 = vector.broadcast %424 : vector<8x1xf32> to vector<8x128xf32>
    %429 = vector.broadcast %427 : vector<1x128xf32> to vector<8x128xf32>
    %430 = arith.mulf %428, %429 : vector<8x128xf32>
    %c0_238 = arith.constant 0 : index
    %c0_239 = arith.constant 0 : index
    %431 = vector.load %arg3[%c0_238, %c0_239] : memref<1x512xf32, #tpu.memory_space<vmem>>, vector<1x128xf32>
    %432 = vector.broadcast %431 : vector<1x128xf32> to vector<8x128xf32>
    %433 = arith.addf %430, %432 : vector<8x128xf32>
    %434 = arith.addf %433, %426 : vector<8x128xf32>
    %cst_240 = arith.constant 5.000000e-01 : f32
    %435 = vector.broadcast %cst_240 : f32 to vector<8x128xf32>
    %436 = arith.mulf %435, %434 : vector<8x128xf32>
    %437 = math.tanh %436 : vector<8x128xf32>
    %cst_241 = arith.constant 1.000000e+00 : f32
    %438 = vector.broadcast %cst_241 : f32 to vector<8x128xf32>
    %439 = arith.addf %437, %438 : vector<8x128xf32>
    %cst_242 = arith.constant 5.000000e-01 : f32
    %440 = vector.broadcast %cst_242 : f32 to vector<8x128xf32>
    %441 = arith.mulf %440, %439 : vector<8x128xf32>
    %c0_243 = arith.constant 0 : index
    %c128_244 = arith.constant 128 : index
    %442 = vector.load %arg4[%c0_243, %c128_244] : memref<128x512xf32, #tpu.memory_space<vmem>>, vector<128x128xf32>
    %cst_245 = arith.constant dense<0.000000e+00> : vector<8x128xf32>
    %443 = tpu.matmul %421, %442, %cst_245 {dimension_numbers = #tpu.dot_dimension_numbers<[1], [0], [0], [1], [0, 0, 1, 1], [], []>} : vector<8x128xf32>, vector<128x128xf32>, vector<8x128xf32> -> vector<8x128xf32>
    %c0_246 = arith.constant 0 : index
    %c128_247 = arith.constant 128 : index
    %444 = vector.load %arg2[%c0_246, %c128_247] : memref<1x512xf32, #tpu.memory_space<vmem>>, vector<1x128xf32>
    %445 = vector.broadcast %424 : vector<8x1xf32> to vector<8x128xf32>
    %446 = vector.broadcast %444 : vector<1x128xf32> to vector<8x128xf32>
    %447 = arith.mulf %445, %446 : vector<8x128xf32>
    %c0_248 = arith.constant 0 : index
    %c128_249 = arith.constant 128 : index
    %448 = vector.load %arg3[%c0_248, %c128_249] : memref<1x512xf32, #tpu.memory_space<vmem>>, vector<1x128xf32>
    %449 = vector.broadcast %448 : vector<1x128xf32> to vector<8x128xf32>
    %450 = arith.addf %447, %449 : vector<8x128xf32>
    %451 = arith.addf %450, %443 : vector<8x128xf32>
    %cst_250 = arith.constant 5.000000e-01 : f32
    %452 = vector.broadcast %cst_250 : f32 to vector<8x128xf32>
    %453 = arith.mulf %452, %451 : vector<8x128xf32>
    %454 = math.tanh %453 : vector<8x128xf32>
    %cst_251 = arith.constant 1.000000e+00 : f32
    %455 = vector.broadcast %cst_251 : f32 to vector<8x128xf32>
    %456 = arith.addf %454, %455 : vector<8x128xf32>
    %cst_252 = arith.constant 5.000000e-01 : f32
    %457 = vector.broadcast %cst_252 : f32 to vector<8x128xf32>
    %458 = arith.mulf %457, %456 : vector<8x128xf32>
    %c0_253 = arith.constant 0 : index
    %c256_254 = arith.constant 256 : index
    %459 = vector.load %arg4[%c0_253, %c256_254] : memref<128x512xf32, #tpu.memory_space<vmem>>, vector<128x128xf32>
    %cst_255 = arith.constant dense<0.000000e+00> : vector<8x128xf32>
    %460 = tpu.matmul %421, %459, %cst_255 {dimension_numbers = #tpu.dot_dimension_numbers<[1], [0], [0], [1], [0, 0, 1, 1], [], []>} : vector<8x128xf32>, vector<128x128xf32>, vector<8x128xf32> -> vector<8x128xf32>
    %c0_256 = arith.constant 0 : index
    %c256_257 = arith.constant 256 : index
    %461 = vector.load %arg2[%c0_256, %c256_257] : memref<1x512xf32, #tpu.memory_space<vmem>>, vector<1x128xf32>
    %462 = vector.broadcast %424 : vector<8x1xf32> to vector<8x128xf32>
    %463 = vector.broadcast %461 : vector<1x128xf32> to vector<8x128xf32>
    %464 = arith.mulf %462, %463 : vector<8x128xf32>
    %c0_258 = arith.constant 0 : index
    %c256_259 = arith.constant 256 : index
    %465 = vector.load %arg3[%c0_258, %c256_259] : memref<1x512xf32, #tpu.memory_space<vmem>>, vector<1x128xf32>
    %466 = vector.broadcast %465 : vector<1x128xf32> to vector<8x128xf32>
    %467 = arith.addf %464, %466 : vector<8x128xf32>
    %468 = arith.addf %467, %460 : vector<8x128xf32>
    %469 = math.tanh %468 : vector<8x128xf32>
    %c0_260 = arith.constant 0 : index
    %c384_261 = arith.constant 384 : index
    %470 = vector.load %arg4[%c0_260, %c384_261] : memref<128x512xf32, #tpu.memory_space<vmem>>, vector<128x128xf32>
    %cst_262 = arith.constant dense<0.000000e+00> : vector<8x128xf32>
    %471 = tpu.matmul %421, %470, %cst_262 {dimension_numbers = #tpu.dot_dimension_numbers<[1], [0], [0], [1], [0, 0, 1, 1], [], []>} : vector<8x128xf32>, vector<128x128xf32>, vector<8x128xf32> -> vector<8x128xf32>
    %c0_263 = arith.constant 0 : index
    %c384_264 = arith.constant 384 : index
    %472 = vector.load %arg2[%c0_263, %c384_264] : memref<1x512xf32, #tpu.memory_space<vmem>>, vector<1x128xf32>
    %473 = vector.broadcast %424 : vector<8x1xf32> to vector<8x128xf32>
    %474 = vector.broadcast %472 : vector<1x128xf32> to vector<8x128xf32>
    %475 = arith.mulf %473, %474 : vector<8x128xf32>
    %c0_265 = arith.constant 0 : index
    %c384_266 = arith.constant 384 : index
    %476 = vector.load %arg3[%c0_265, %c384_266] : memref<1x512xf32, #tpu.memory_space<vmem>>, vector<1x128xf32>
    %477 = vector.broadcast %476 : vector<1x128xf32> to vector<8x128xf32>
    %478 = arith.addf %475, %477 : vector<8x128xf32>
    %479 = arith.addf %478, %471 : vector<8x128xf32>
    %cst_267 = arith.constant 5.000000e-01 : f32
    %480 = vector.broadcast %cst_267 : f32 to vector<8x128xf32>
    %481 = arith.mulf %480, %479 : vector<8x128xf32>
    %482 = math.tanh %481 : vector<8x128xf32>
    %cst_268 = arith.constant 1.000000e+00 : f32
    %483 = vector.broadcast %cst_268 : f32 to vector<8x128xf32>
    %484 = arith.addf %482, %483 : vector<8x128xf32>
    %cst_269 = arith.constant 5.000000e-01 : f32
    %485 = vector.broadcast %cst_269 : f32 to vector<8x128xf32>
    %486 = arith.mulf %485, %484 : vector<8x128xf32>
    %487 = arith.mulf %458, %419 : vector<8x128xf32>
    %488 = arith.mulf %441, %469 : vector<8x128xf32>
    %489 = arith.addf %487, %488 : vector<8x128xf32>
    %490 = math.tanh %489 : vector<8x128xf32>
    %491 = arith.mulf %486, %490 : vector<8x128xf32>
    %c7_i32 = arith.constant 7 : i32
    %492 = arith.index_cast %c7_i32 : i32 to index
    %c0_270 = arith.constant 0 : index
    %c0_271 = arith.constant 0 : index
    %493 = vector.load %arg1[%492, %c0_270, %c0_271] : memref<8x8x1xf32, #tpu.memory_space<vmem>>, vector<1x8x1xf32>
    %494 = vector.shape_cast %493 : vector<1x8x1xf32> to vector<8x1xf32>
    %c0_272 = arith.constant 0 : index
    %c0_273 = arith.constant 0 : index
    %495 = vector.load %arg4[%c0_272, %c0_273] : memref<128x512xf32, #tpu.memory_space<vmem>>, vector<128x128xf32>
    %cst_274 = arith.constant dense<0.000000e+00> : vector<8x128xf32>
    %496 = tpu.matmul %491, %495, %cst_274 {dimension_numbers = #tpu.dot_dimension_numbers<[1], [0], [0], [1], [0, 0, 1, 1], [], []>} : vector<8x128xf32>, vector<128x128xf32>, vector<8x128xf32> -> vector<8x128xf32>
    %c0_275 = arith.constant 0 : index
    %c0_276 = arith.constant 0 : index
    %497 = vector.load %arg2[%c0_275, %c0_276] : memref<1x512xf32, #tpu.memory_space<vmem>>, vector<1x128xf32>
    %498 = vector.broadcast %494 : vector<8x1xf32> to vector<8x128xf32>
    %499 = vector.broadcast %497 : vector<1x128xf32> to vector<8x128xf32>
    %500 = arith.mulf %498, %499 : vector<8x128xf32>
    %c0_277 = arith.constant 0 : index
    %c0_278 = arith.constant 0 : index
    %501 = vector.load %arg3[%c0_277, %c0_278] : memref<1x512xf32, #tpu.memory_space<vmem>>, vector<1x128xf32>
    %502 = vector.broadcast %501 : vector<1x128xf32> to vector<8x128xf32>
    %503 = arith.addf %500, %502 : vector<8x128xf32>
    %504 = arith.addf %503, %496 : vector<8x128xf32>
    %cst_279 = arith.constant 5.000000e-01 : f32
    %505 = vector.broadcast %cst_279 : f32 to vector<8x128xf32>
    %506 = arith.mulf %505, %504 : vector<8x128xf32>
    %507 = math.tanh %506 : vector<8x128xf32>
    %cst_280 = arith.constant 1.000000e+00 : f32
    %508 = vector.broadcast %cst_280 : f32 to vector<8x128xf32>
    %509 = arith.addf %507, %508 : vector<8x128xf32>
    %cst_281 = arith.constant 5.000000e-01 : f32
    %510 = vector.broadcast %cst_281 : f32 to vector<8x128xf32>
    %511 = arith.mulf %510, %509 : vector<8x128xf32>
    %c0_282 = arith.constant 0 : index
    %c128_283 = arith.constant 128 : index
    %512 = vector.load %arg4[%c0_282, %c128_283] : memref<128x512xf32, #tpu.memory_space<vmem>>, vector<128x128xf32>
    %cst_284 = arith.constant dense<0.000000e+00> : vector<8x128xf32>
    %513 = tpu.matmul %491, %512, %cst_284 {dimension_numbers = #tpu.dot_dimension_numbers<[1], [0], [0], [1], [0, 0, 1, 1], [], []>} : vector<8x128xf32>, vector<128x128xf32>, vector<8x128xf32> -> vector<8x128xf32>
    %c0_285 = arith.constant 0 : index
    %c128_286 = arith.constant 128 : index
    %514 = vector.load %arg2[%c0_285, %c128_286] : memref<1x512xf32, #tpu.memory_space<vmem>>, vector<1x128xf32>
    %515 = vector.broadcast %494 : vector<8x1xf32> to vector<8x128xf32>
    %516 = vector.broadcast %514 : vector<1x128xf32> to vector<8x128xf32>
    %517 = arith.mulf %515, %516 : vector<8x128xf32>
    %c0_287 = arith.constant 0 : index
    %c128_288 = arith.constant 128 : index
    %518 = vector.load %arg3[%c0_287, %c128_288] : memref<1x512xf32, #tpu.memory_space<vmem>>, vector<1x128xf32>
    %519 = vector.broadcast %518 : vector<1x128xf32> to vector<8x128xf32>
    %520 = arith.addf %517, %519 : vector<8x128xf32>
    %521 = arith.addf %520, %513 : vector<8x128xf32>
    %cst_289 = arith.constant 5.000000e-01 : f32
    %522 = vector.broadcast %cst_289 : f32 to vector<8x128xf32>
    %523 = arith.mulf %522, %521 : vector<8x128xf32>
    %524 = math.tanh %523 : vector<8x128xf32>
    %cst_290 = arith.constant 1.000000e+00 : f32
    %525 = vector.broadcast %cst_290 : f32 to vector<8x128xf32>
    %526 = arith.addf %524, %525 : vector<8x128xf32>
    %cst_291 = arith.constant 5.000000e-01 : f32
    %527 = vector.broadcast %cst_291 : f32 to vector<8x128xf32>
    %528 = arith.mulf %527, %526 : vector<8x128xf32>
    %c0_292 = arith.constant 0 : index
    %c256_293 = arith.constant 256 : index
    %529 = vector.load %arg4[%c0_292, %c256_293] : memref<128x512xf32, #tpu.memory_space<vmem>>, vector<128x128xf32>
    %cst_294 = arith.constant dense<0.000000e+00> : vector<8x128xf32>
    %530 = tpu.matmul %491, %529, %cst_294 {dimension_numbers = #tpu.dot_dimension_numbers<[1], [0], [0], [1], [0, 0, 1, 1], [], []>} : vector<8x128xf32>, vector<128x128xf32>, vector<8x128xf32> -> vector<8x128xf32>
    %c0_295 = arith.constant 0 : index
    %c256_296 = arith.constant 256 : index
    %531 = vector.load %arg2[%c0_295, %c256_296] : memref<1x512xf32, #tpu.memory_space<vmem>>, vector<1x128xf32>
    %532 = vector.broadcast %494 : vector<8x1xf32> to vector<8x128xf32>
    %533 = vector.broadcast %531 : vector<1x128xf32> to vector<8x128xf32>
    %534 = arith.mulf %532, %533 : vector<8x128xf32>
    %c0_297 = arith.constant 0 : index
    %c256_298 = arith.constant 256 : index
    %535 = vector.load %arg3[%c0_297, %c256_298] : memref<1x512xf32, #tpu.memory_space<vmem>>, vector<1x128xf32>
    %536 = vector.broadcast %535 : vector<1x128xf32> to vector<8x128xf32>
    %537 = arith.addf %534, %536 : vector<8x128xf32>
    %538 = arith.addf %537, %530 : vector<8x128xf32>
    %539 = math.tanh %538 : vector<8x128xf32>
    %c0_299 = arith.constant 0 : index
    %c384_300 = arith.constant 384 : index
    %540 = vector.load %arg4[%c0_299, %c384_300] : memref<128x512xf32, #tpu.memory_space<vmem>>, vector<128x128xf32>
    %cst_301 = arith.constant dense<0.000000e+00> : vector<8x128xf32>
    %541 = tpu.matmul %491, %540, %cst_301 {dimension_numbers = #tpu.dot_dimension_numbers<[1], [0], [0], [1], [0, 0, 1, 1], [], []>} : vector<8x128xf32>, vector<128x128xf32>, vector<8x128xf32> -> vector<8x128xf32>
    %c0_302 = arith.constant 0 : index
    %c384_303 = arith.constant 384 : index
    %542 = vector.load %arg2[%c0_302, %c384_303] : memref<1x512xf32, #tpu.memory_space<vmem>>, vector<1x128xf32>
    %543 = vector.broadcast %494 : vector<8x1xf32> to vector<8x128xf32>
    %544 = vector.broadcast %542 : vector<1x128xf32> to vector<8x128xf32>
    %545 = arith.mulf %543, %544 : vector<8x128xf32>
    %c0_304 = arith.constant 0 : index
    %c384_305 = arith.constant 384 : index
    %546 = vector.load %arg3[%c0_304, %c384_305] : memref<1x512xf32, #tpu.memory_space<vmem>>, vector<1x128xf32>
    %547 = vector.broadcast %546 : vector<1x128xf32> to vector<8x128xf32>
    %548 = arith.addf %545, %547 : vector<8x128xf32>
    %549 = arith.addf %548, %541 : vector<8x128xf32>
    %cst_306 = arith.constant 5.000000e-01 : f32
    %550 = vector.broadcast %cst_306 : f32 to vector<8x128xf32>
    %551 = arith.mulf %550, %549 : vector<8x128xf32>
    %552 = math.tanh %551 : vector<8x128xf32>
    %cst_307 = arith.constant 1.000000e+00 : f32
    %553 = vector.broadcast %cst_307 : f32 to vector<8x128xf32>
    %554 = arith.addf %552, %553 : vector<8x128xf32>
    %cst_308 = arith.constant 5.000000e-01 : f32
    %555 = vector.broadcast %cst_308 : f32 to vector<8x128xf32>
    %556 = arith.mulf %555, %554 : vector<8x128xf32>
    %557 = arith.mulf %528, %489 : vector<8x128xf32>
    %558 = arith.mulf %511, %539 : vector<8x128xf32>
    %559 = arith.addf %557, %558 : vector<8x128xf32>
    %560 = math.tanh %559 : vector<8x128xf32>
    %561 = arith.mulf %556, %560 : vector<8x128xf32>
    %c8_i32 = arith.constant 8 : i32
    %c0_309 = arith.constant 0 : index
    %c0_310 = arith.constant 0 : index
    %562 = vector.load %arg5[%c0_309, %c0_310] : memref<1x128xf32, #tpu.memory_space<vmem>>, vector<1x128xf32>
    %563 = vector.broadcast %562 : vector<1x128xf32> to vector<8x128xf32>
    %564 = arith.mulf %561, %563 : vector<8x128xf32>
    %cst_311 = arith.constant dense<0.000000e+00> : vector<8xf32>
    %565 = vector.multi_reduction <add>, %564, %cst_311 [1] : vector<8x128xf32> to vector<8xf32>
    %566 = vector.shape_cast %565 : vector<8xf32> to vector<8x1xf32>
    %c0_312 = arith.constant 0 : index
    %c0_313 = arith.constant 0 : index
    %567 = vector.load %arg6[%c0_312, %c0_313] : memref<1x128xf32, #tpu.memory_space<vmem>>, vector<1x128xf32>
    %568 = vector.broadcast %566 : vector<8x1xf32> to vector<8x128xf32>
    %569 = vector.broadcast %567 : vector<1x128xf32> to vector<8x128xf32>
    %570 = arith.addf %568, %569 : vector<8x128xf32>
    %c0_314 = arith.constant 0 : index
    %c0_315 = arith.constant 0 : index
    %571 = vector.load %arg7[%c0_314, %c0_315] : memref<8x128xf32, #tpu.memory_space<vmem>>, vector<8x128xf32>
    tpu.vector_store %arg7[%c0_314, %c0_315], %570 {strides = array<i32>} : memref<8x128xf32, #tpu.memory_space<vmem>>, vector<8x128xf32>,
    return
  }
  func.func @transform_0(%arg0: i32) -> (i32, i32, i32) {
    %c0_i32 = arith.constant 0 : i32
    %c0_i32_0 = arith.constant 0 : i32
    %c0_i32_1 = arith.constant 0 : i32
    return %c0_i32, %arg0, %c0_i32_0 : i32, i32, i32
  }
  func.func @transform_1(%arg0: i32) -> (i32, i32) {
    %c0_i32 = arith.constant 0 : i32
    %c0_i32_0 = arith.constant 0 : i32
    %c0_i32_1 = arith.constant 0 : i32
    return %c0_i32, %c0_i32_0 : i32, i32
  }
  func.func @transform_2(%arg0: i32) -> (i32, i32) {
    %c0_i32 = arith.constant 0 : i32
    %c0_i32_0 = arith.constant 0 : i32
    %c0_i32_1 = arith.constant 0 : i32
    return %c0_i32, %c0_i32_0 : i32, i32
  }
  func.func @transform_3(%arg0: i32) -> (i32, i32) {
    %c0_i32 = arith.constant 0 : i32
    %c0_i32_0 = arith.constant 0 : i32
    %c0_i32_1 = arith.constant 0 : i32
    return %c0_i32, %c0_i32_0 : i32, i32
  }
  func.func @transform_4(%arg0: i32) -> (i32, i32) {
    %c0_i32 = arith.constant 0 : i32
    %c0_i32_0 = arith.constant 0 : i32
    %c0_i32_1 = arith.constant 0 : i32
    return %c0_i32, %c0_i32_0 : i32, i32
  }
  func.func @transform_5(%arg0: i32) -> (i32, i32) {
    %c0_i32 = arith.constant 0 : i32
    %c0_i32_0 = arith.constant 0 : i32
    %c0_i32_1 = arith.constant 0 : i32
    return %c0_i32, %c0_i32_0 : i32, i32
  }
  func.func @transform_6(%arg0: i32) -> (i32, i32) {
    %c0_i32 = arith.constant 0 : i32
    %c0_i32_0 = arith.constant 0 : i32
    return %arg0, %c0_i32 : i32, i32
  }
}

</mosaic_0001>

<bundles_post_ra>
// kernel: lstm_survival.1
= control target key start
LH: loop header
LB: loop body
LE: loop exit
PB: predicated region body
PF: predicated region fallthrough
CT: control target
= control target key end

     0   :  { %v2641_v3 = vmov 0   ;;  %s2634_s3 = inlined_call_operand.vmem [shape: f32[128,512], index: 3, kind: input, shape index: {}]   ;;  %s2635_s0 = inlined_call_operand.vmem [shape: f32[8,8,1], index: 0, kind: input, shape index: {}]   ;;  %s2636_s1 = inlined_call_operand.vmem [shape: f32[1,512], index: 1, kind: input, shape index: {}]   ;;  %s2637_s2 = inlined_call_operand.vmem [shape: f32[1,512], index: 2, kind: input, shape index: {}]   ;;  %s2638_s4 = inlined_call_operand.vmem [shape: f32[1,128], index: 4, kind: input, shape index: {}]   ;;  %s2639_s5 = inlined_call_operand.vmem [shape: f32[1,128], index: 5, kind: input, shape index: {}]   ;;  %s2640_s6 = inlined_call_operand.vmem [shape: f32[8,128], index: 6, kind: output, shape index: {}]  }
   0x1   :  { %v1285_v0 = vld [vmem:[%s2634_s3 + $0x1e0] sm:$0xff]  ;;  %v1290_v1 = vld [vmem:[%s2634_s3 + $0x1e8] sm:$0xff]  ;;  %v1295_v2 = vld [vmem:[%s2634_s3 + $0x1f0] sm:$0xff]  ;;  %1080 = vset.pattern.permute.xlu0 %v2641_v3  ;;  %1081 = vset.pattern.permute.xlu1 %v2641_v3 }
   0x2   :  { %40 = vmatpush.msra.mxu0 %v1285_v0  ;;  %96 = vmatpush.msra.mxu1 %v1290_v1  ;;  %v1304_v4 = vld [vmem:[%s2634_s3 + $0x1f8] sm:$0xff]  ;;  %v1309_v5 = vld [vmem:[%s2634_s3 + $0x1c0] sm:$0xff]  ;;  %v1314_v6 = vld [vmem:[%s2634_s3 + $0x1c8] sm:$0xff] }
   0x3   :  { %147 = vmatpush.msra.mxu2 %v1295_v2  ;;  %195 = vmatpush.msra.mxu3 %v1304_v4  ;;  %v1321_v7 = vld [vmem:[%s2634_s3 + $0x1d0] sm:$0xff]  ;;  %v1326_v8 = vld [vmem:[%s2634_s3 + $0x1d8] sm:$0xff]  ;;  %v1331_v9 = vld [vmem:[%s2634_s3 + $0x1a0] sm:$0xff] }
   0x4   :  { %41 = vmatpush.msra.mxu0 %v1309_v5  ;;  %97 = vmatpush.msra.mxu1 %v1314_v6  ;;  %v1338_v10 = vld [vmem:[%s2634_s3 + $0x1a8] sm:$0xff]  ;;  %v1343_v11 = vld [vmem:[%s2634_s3 + $0x1b0] sm:$0xff]  ;;  %v1348_v12 = vld [vmem:[%s2634_s3 + $0x1b8] sm:$0xff] }
   0x5   :  { %148 = vmatpush.msra.mxu2 %v1321_v7  ;;  %196 = vmatpush.msra.mxu3 %v1326_v8  ;;  %v1355_v13 = vld [vmem:[%s2634_s3 + $0x180] sm:$0xff]  ;;  %v1360_v14 = vld [vmem:[%s2634_s3 + $0x188] sm:$0xff]  ;;  %v1367_v15 = vld [vmem:[%s2634_s3 + $0x190] sm:$0xff] }
   0x6   :  { %42 = vmatpush.msra.mxu0 %v1331_v9  ;;  %98 = vmatpush.msra.mxu1 %v1338_v10  ;;  %v1372_v16 = vld [vmem:[%s2634_s3 + $0x198] sm:$0xff]  ;;  %v1379_v17 = vld [vmem:[%s2634_s3 + $0x160] sm:$0xff]  ;;  %v1384_v18 = vld [vmem:[%s2634_s3 + $0x168] sm:$0xff] }
   0x7   :  { %149 = vmatpush.msra.mxu2 %v1343_v11  ;;  %197 = vmatpush.msra.mxu3 %v1348_v12  ;;  %v1391_v19 = vld [vmem:[%s2634_s3 + $0x170] sm:$0xff]  ;;  %v1396_v20 = vld [vmem:[%s2634_s3 + $0x178] sm:$0xff]  ;;  %v1403_v21 = vld [vmem:[%s2634_s3 + $0x140] sm:$0xff] }
   0x8   :  { %43 = vmatpush.msra.mxu0 %v1355_v13  ;;  %99 = vmatpush.msra.mxu1 %v1360_v14  ;;  %v1408_v22 = vld [vmem:[%s2634_s3 + $0x148] sm:$0xff]  ;;  %v1415_v23 = vld [vmem:[%s2634_s3 + $0x150] sm:$0xff]  ;;  %v1420_v24 = vld [vmem:[%s2634_s3 + $0x158] sm:$0xff] }
   0x9   :  { %150 = vmatpush.msra.mxu2 %v1367_v15  ;;  %198 = vmatpush.msra.mxu3 %v1372_v16  ;;  %v1427_v25 = vld [vmem:[%s2634_s3 + $0x120] sm:$0xff]  ;;  %v1432_v26 = vld [vmem:[%s2634_s3 + $0x128] sm:$0xff]  ;;  %v1439_v27 = vld [vmem:[%s2634_s3 + $0x130] sm:$0xff] }
   0xa   :  { %44 = vmatpush.msra.mxu0 %v1379_v17  ;;  %100 = vmatpush.msra.mxu1 %v1384_v18  ;;  %v1444_v28 = vld [vmem:[%s2634_s3 + $0x138] sm:$0xff]  ;;  %v1451_v29 = vld [vmem:[%s2634_s3 + $0x100] sm:$0xff]  ;;  %v1456_v30 = vld [vmem:[%s2634_s3 + $0x108] sm:$0xff] }
   0xb   :  { %151 = vmatpush.msra.mxu2 %v1391_v19  ;;  %199 = vmatpush.msra.mxu3 %v1396_v20  ;;  %v1463_v31 = vld [vmem:[%s2634_s3 + $0x110] sm:$0xff]  ;;  %v1468_v32 = vld [vmem:[%s2634_s3 + $0x118] sm:$0xff]  ;;  %v1475_v33 = vld [vmem:[%s2634_s3 + $0xe0] sm:$0xff] }
   0xc   :  { %45 = vmatpush.msra.mxu0 %v1403_v21  ;;  %101 = vmatpush.msra.mxu1 %v1408_v22  ;;  %v1480_v34 = vld [vmem:[%s2634_s3 + $0xe8] sm:$0xff]  ;;  %v1487_v35 = vld [vmem:[%s2634_s3 + $0xf0] sm:$0xff]  ;;  %v1492_v36 = vld [vmem:[%s2634_s3 + $0xf8] sm:$0xff] }
   0xd   :  { %152 = vmatpush.msra.mxu2 %v1415_v23  ;;  %200 = vmatpush.msra.mxu3 %v1420_v24  ;;  %v1499_v37 = vld [vmem:[%s2634_s3 + $0xc0] sm:$0xff]  ;;  %v1504_v38 = vld [vmem:[%s2634_s3 + $0xc8] sm:$0xff]  ;;  %v1511_v39 = vld [vmem:[%s2634_s3 + $0xd0] sm:$0xff] }
   0xe   :  { %46 = vmatpush.msra.mxu0 %v1427_v25  ;;  %102 = vmatpush.msra.mxu1 %v1432_v26  ;;  %v1516_v40 = vld [vmem:[%s2634_s3 + $0xd8] sm:$0xff]  ;;  %v1523_v41 = vld [vmem:[%s2634_s3 + $0xa0] sm:$0xff]  ;;  %v1528_v42 = vld [vmem:[%s2634_s3 + $0xa8] sm:$0xff] }
   0xf   :  { %153 = vmatpush.msra.mxu2 %v1439_v27  ;;  %201 = vmatpush.msra.mxu3 %v1444_v28  ;;  %v1535_v43 = vld [vmem:[%s2634_s3 + $0xb0] sm:$0xff]  ;;  %v1540_v44 = vld [vmem:[%s2634_s3 + $0xb8] sm:$0xff]  ;;  %v1547_v45 = vld [vmem:[%s2634_s3 + $0x80] sm:$0xff] }
  0x10   :  { %47 = vmatpush.msra.mxu0 %v1451_v29  ;;  %103 = vmatpush.msra.mxu1 %v1456_v30  ;;  %2743 = vst [vmem:[#allocation2_spill] sm:$0xff] %v1535_v43  ;;  %v1552_v46 = vld [vmem:[%s2634_s3 + $0x88] sm:$0xff]  ;;  %v1557_v47 = vld [vmem:[%s2634_s3 + $0x90] sm:$0xff]  ;;  %v1564_v48 = vld [vmem:[%s2634_s3 + $0x98] sm:$0xff] }
  0x11   :  { %154 = vmatpush.msra.mxu2 %v1463_v31  ;;  %202 = vmatpush.msra.mxu3 %v1468_v32  ;;  %2744 = vst [vmem:[#allocation3_spill] sm:$0xff] %v1540_v44  ;;  %v23_v49 = vld [vmem:[%s2635_s0] sm:$0xff]  ;;  %v1579_v51 = vld [vmem:[%s2634_s3 + $0x68] sm:$0xff]  ;;  %v1586_v52 = vld [vmem:[%s2634_s3 + $0x70] sm:$0xff] }
  0x12   :  { %48 = vmatpush.msra.mxu0 %v1475_v33  ;;  %104 = vmatpush.msra.mxu1 %v1480_v34  ;;  %2745 = vst [vmem:[#allocation4_spill] sm:$0xff] %v1547_v45  ;;  %v1572_v50 = vld [vmem:[%s2634_s3 + $0x60] sm:$0xff]  ;;  %v1593_v53 = vld [vmem:[%s2634_s3 + $0x78] sm:$0xff]  ;;  %v1604_v55 = vld [vmem:[%s2634_s3 + $0x48] sm:$0xff] }
  0x13   :  { %155 = vmatpush.msra.mxu2 %v1487_v35  ;;  %203 = vmatpush.msra.mxu3 %v1492_v36  ;;  %2746 = vst [vmem:[#allocation5_spill] sm:$0xff] %v1552_v46  ;;  %v1598_v54 = vld [vmem:[%s2634_s3 + $0x40] sm:$0xff]  ;;  %v1609_v56 = vld [vmem:[%s2634_s3 + $0x50] sm:$0xff]  ;;  %v1616_v57 = vld [vmem:[%s2634_s3 + $0x58] sm:$0xff] }
  0x14   :  { %49 = vmatpush.msra.mxu0 %v1499_v37  ;;  %105 = vmatpush.msra.mxu1 %v1504_v38  ;;  %2747 = vst [vmem:[#allocation6_spill] sm:$0xff] %v1557_v47  ;;  %v1621_v58 = vld [vmem:[%s2634_s3 + $0x20] sm:$0xff]  ;;  %v1628_v59 = vld [vmem:[%s2634_s3 + $0x28] sm:$0xff]  ;;  %v1633_v60 = vld [vmem:[%s2634_s3 + $0x30] sm:$0xff] }
  0x15   :  { %156 = vmatpush.msra.mxu2 %v1511_v39  ;;  %204 = vmatpush.msra.mxu3 %v1516_v40  ;;  %2748 = vst [vmem:[#allocation7_spill] sm:$0xff] %v1564_v48  ;;  %v1638_v61 = vld [vmem:[%s2634_s3 + $0x38] sm:$0xff]  ;;  %v1645_v62 = vld [vmem:[%s2634_s3] sm:$0xff]  ;;  %v1650_v63 = vld [vmem:[%s2634_s3 + $0x8] sm:$0xff] }
  0x16   :  { %50 = vmatpush.msra.mxu0 %v1523_v41  ;;  %106 = vmatpush.msra.mxu1 %v1528_v42  ;;  %2749 = vst [vmem:[#allocation8_spill] sm:$0xff] %v1572_v50  ;;  %v1664_v3 = vld [vmem:[%s2634_s3 + $0x18] sm:$0xff] }
  0x17   :  { %157 = vmatpush.msra.mxu2 %v1535_v43  ;;  %205 = vmatpush.msra.mxu3 %v1540_v44  ;;  %2750 = vst [vmem:[#allocation9_spill] sm:$0xff] %v1579_v51 }
  0x18   :  { %51 = vmatpush.msra.mxu0 %v1547_v45  ;;  %107 = vmatpush.msra.mxu1 %v1552_v46  ;;  %2751 = vst [vmem:[#allocation10_spill] sm:$0xff] %v1586_v52 }
  0x19   :  { %158 = vmatpush.msra.mxu2 %v1557_v47  ;;  %206 = vmatpush.msra.mxu3 %v1564_v48  ;;  %2752 = vst [vmem:[#allocation11_spill] sm:$0xff] %v1593_v53 }
  0x1a   :  { %2753 = vst [vmem:[#allocation12_spill] sm:$0xff] %v1598_v54  ;;  %63 = vperm.xlu0 %1080, %v23_v49   ;;  %52 = vmatpush.msra.mxu0 %v1572_v50  ;;  %v1655_v49 = vld [vmem:[%s2634_s3 + $0x10] sm:$0xff] }
  0x1b   :  { %2754 = vst [vmem:[#allocation13_spill] sm:$0xff] %v1604_v55  ;;  %108 = vmatpush.msra.mxu1 %v1579_v51  ;;  %159 = vmatpush.msra.mxu2 %v1586_v52 }
  0x1c   :  { %2755 = vst [vmem:[#allocation14_spill] sm:$0xff] %v1609_v56  ;;  %207 = vmatpush.msra.mxu3 %v1593_v53  ;;  %53 = vmatpush.msra.mxu0 %v1598_v54 }
  0x1d   :  { %2756 = vst [vmem:[#allocation15_spill] sm:$0xff] %v1616_v57  ;;  %109 = vmatpush.msra.mxu1 %v1604_v55  ;;  %160 = vmatpush.msra.mxu2 %v1609_v56  ;;  %v1071_v56 = vld [vmem:[%s2635_s0 + $0x8] sm:$0xff] }
  0x1e   :  { %2757 = vst [vmem:[#allocation16_spill] sm:$0xff] %v1621_v58  ;;  %208 = vmatpush.msra.mxu3 %v1616_v57  ;;  %54 = vmatpush.msra.mxu0 %v1621_v58 }
  0x1f   :  { %2758 = vst [vmem:[#allocation17_spill] sm:$0xff] %v1628_v59  ;;  %110 = vmatpush.msra.mxu1 %v1628_v59  ;;  %161 = vmatpush.msra.mxu2 %v1633_v60 }
  0x20   :  { %2759 = vst [vmem:[#allocation18_spill] sm:$0xff] %v1633_v60  ;;  %209 = vmatpush.msra.mxu3 %v1638_v61  ;;  %55 = vmatpush.msra.mxu0 %v1645_v62  ;;  %v1246_v60 = vmov 0.0  }
  0x21   :  { %2760 = vst [vmem:[#allocation19_spill] sm:$0xff] %v1638_v61  ;;  %111 = vmatpush.msra.mxu1 %v1650_v63  ;;  %162 = vmatpush.msra.mxu2 %v1655_v49 }
  0x22   :  { %2761 = vst [vmem:[#allocation20_spill] sm:$0xff] %v1645_v62  ;;  %210 = vmatpush.msra.mxu3 %v1664_v3  ;;  %259 = vperm.xlu0 %1080, %v1071_v56  }
  0x23   :  { %2762 = vst [vmem:[#allocation21_spill] sm:$0xff] %v1650_v63  ;;  %56 = vmatmul.f32.vlgmr.msra.gmra.mxu0 %v1246_v60  ;;  %112 = vmatmul.f32.vlgmr.msra.gmra.mxu1 %v1246_v60  ;;  %v2765_v56 = vld [vmem:[#allocation14_spill] sm:$0xff] }
  0x24   :  { %2763 = vst [vmem:[#allocation22_spill] sm:$0xff] %v1655_v49  ;;  %163 = vmatmul.f32.vlgmr.msra.gmra.mxu2 %v1246_v60  ;;  %211 = vmatmul.f32.vlgmr.msra.gmra.mxu3 %v1246_v60  ;;  %v1076_v49 = vld [vmem:[%s2635_s0 + $0x30] sm:$0xff] }
  0x25   :  { %2764 = vst [vmem:[#allocation23_spill] sm:$0xff] %v1664_v3  ;;  %237 = vmatpush.msrb.mxu0 %v1285_v0  ;;  %269 = vmatpush.msrb.mxu1 %v1290_v1 }
  0x26   :  { %296 = vmatpush.msrb.mxu2 %v1295_v2  ;;  %320 = vmatpush.msrb.mxu3 %v1304_v4 }
  0x27   :  { %238 = vmatpush.msrb.mxu0 %v1309_v5  ;;  %270 = vmatpush.msrb.mxu1 %v1314_v6  ;;  %v2766_v60 = vld [vmem:[#allocation18_spill] sm:$0xff] }
  0x28   :  { %297 = vmatpush.msrb.mxu2 %v1321_v7  ;;  %321 = vmatpush.msrb.mxu3 %v1326_v8 }
  0x29   :  { %239 = vmatpush.msrb.mxu0 %v1331_v9  ;;  %271 = vmatpush.msrb.mxu1 %v1338_v10 }
  0x2a   :  { %844 = vperm.xlu0 %1080, %v1076_v49   ;;  %298 = vmatpush.msrb.mxu2 %v1343_v11 }
  0x2b   :  { %322 = vmatpush.msrb.mxu3 %v1348_v12  ;;  %240 = vmatpush.msrb.mxu0 %v1355_v13  ;;  %v2767_v49 = vld [vmem:[#allocation22_spill] sm:$0xff] }
  0x2c   :  { %272 = vmatpush.msrb.mxu1 %v1360_v14  ;;  %299 = vmatpush.msrb.mxu2 %v1367_v15 }
  0x2d   :  { %323 = vmatpush.msrb.mxu3 %v1372_v16  ;;  %241 = vmatpush.msrb.mxu0 %v1379_v17 }
  0x2e   :  { %273 = vmatpush.msrb.mxu1 %v1384_v18  ;;  %300 = vmatpush.msrb.mxu2 %v1391_v19 }
  0x2f   :  { %324 = vmatpush.msrb.mxu3 %v1396_v20  ;;  %242 = vmatpush.msrb.mxu0 %v1403_v21 }
  0x30   :  { %274 = vmatpush.msrb.mxu1 %v1408_v22  ;;  %301 = vmatpush.msrb.mxu2 %v1415_v23 }
  0x31   :  { %325 = vmatpush.msrb.mxu3 %v1420_v24  ;;  %243 = vmatpush.msrb.mxu0 %v1427_v25 }
  0x32   :  { %275 = vmatpush.msrb.mxu1 %v1432_v26  ;;  %302 = vmatpush.msrb.mxu2 %v1439_v27 }
  0x33   :  { %326 = vmatpush.msrb.mxu3 %v1444_v28  ;;  %244 = vmatpush.msrb.mxu0 %v1451_v29 }
  0x34   :  { %276 = vmatpush.msrb.mxu1 %v1456_v30  ;;  %303 = vmatpush.msrb.mxu2 %v1463_v31 }
  0x35   :  { %327 = vmatpush.msrb.mxu3 %v1468_v32  ;;  %245 = vmatpush.msrb.mxu0 %v1475_v33 }
  0x36   :  { %277 = vmatpush.msrb.mxu1 %v1480_v34  ;;  %304 = vmatpush.msrb.mxu2 %v1487_v35 }
  0x37   :  { %328 = vmatpush.msrb.mxu3 %v1492_v36  ;;  %246 = vmatpush.msrb.mxu0 %v1499_v37 }
  0x38   :  { %278 = vmatpush.msrb.mxu1 %v1504_v38  ;;  %305 = vmatpush.msrb.mxu2 %v1511_v39 }
  0x39   :  { %329 = vmatpush.msrb.mxu3 %v1516_v40  ;;  %247 = vmatpush.msrb.mxu0 %v1523_v41 }
  0x3a   :  { %279 = vmatpush.msrb.mxu1 %v1528_v42  ;;  %306 = vmatpush.msrb.mxu2 %v1535_v43 }
  0x3b   :  { %330 = vmatpush.msrb.mxu3 %v1540_v44  ;;  %248 = vmatpush.msrb.mxu0 %v1547_v45 }
  0x3c   :  { %280 = vmatpush.msrb.mxu1 %v1552_v46  ;;  %307 = vmatpush.msrb.mxu2 %v1557_v47 }
  0x3d   :  { %331 = vmatpush.msrb.mxu3 %v1564_v48  ;;  %249 = vmatpush.msrb.mxu0 %v1572_v50 }
  0x3e   :  { %281 = vmatpush.msrb.mxu1 %v1579_v51  ;;  %308 = vmatpush.msrb.mxu2 %v1586_v52 }
  0x3f   :  { %332 = vmatpush.msrb.mxu3 %v1593_v53  ;;  %250 = vmatpush.msrb.mxu0 %v1598_v54 }
  0x40   :  { %282 = vmatpush.msrb.mxu1 %v1604_v55  ;;  %309 = vmatpush.msrb.mxu2 %v2765_v56 }
  0x41   :  { %333 = vmatpush.msrb.mxu3 %v1616_v57  ;;  %251 = vmatpush.msrb.mxu0 %v1621_v58 }
  0x42   :  { %283 = vmatpush.msrb.mxu1 %v1628_v59  ;;  %310 = vmatpush.msrb.mxu2 %v2766_v60 }
  0x43   :  { %334 = vmatpush.msrb.mxu3 %v1638_v61  ;;  %252 = vmatpush.msrb.mxu0 %v1645_v62 }
  0x44   :  { %284 = vmatpush.msrb.mxu1 %v1650_v63  ;;  %311 = vmatpush.msrb.mxu2 %v2767_v49 }
  0x45   :  { %335 = vmatpush.msrb.mxu3 %v1664_v3  ;;  %354 = vmatpush.msra.mxu0 %v1285_v0 }
  0x46   :  { %386 = vmatpush.msra.mxu1 %v1290_v1  ;;  %413 = vmatpush.msra.mxu2 %v1295_v2 }
  0x47   :  { %437 = vmatpush.msra.mxu3 %v1304_v4  ;;  %355 = vmatpush.msra.mxu0 %v1309_v5 }
  0x48   :  { %387 = vmatpush.msra.mxu1 %v1314_v6  ;;  %414 = vmatpush.msra.mxu2 %v1321_v7 }
  0x49   :  { %438 = vmatpush.msra.mxu3 %v1326_v8  ;;  %356 = vmatpush.msra.mxu0 %v1331_v9 }
  0x4a   :  { %388 = vmatpush.msra.mxu1 %v1338_v10  ;;  %415 = vmatpush.msra.mxu2 %v1343_v11 }
  0x4b   :  { %439 = vmatpush.msra.mxu3 %v1348_v12  ;;  %357 = vmatpush.msra.mxu0 %v1355_v13 }
  0x4c   :  { %389 = vmatpush.msra.mxu1 %v1360_v14  ;;  %416 = vmatpush.msra.mxu2 %v1367_v15 }
  0x4d   :  { %440 = vmatpush.msra.mxu3 %v1372_v16  ;;  %358 = vmatpush.msra.mxu0 %v1379_v17 }
  0x4e   :  { %390 = vmatpush.msra.mxu1 %v1384_v18  ;;  %417 = vmatpush.msra.mxu2 %v1391_v19 }
  0x4f   :  { %441 = vmatpush.msra.mxu3 %v1396_v20  ;;  %359 = vmatpush.msra.mxu0 %v1403_v21 }
  0x50   :  { %391 = vmatpush.msra.mxu1 %v1408_v22  ;;  %418 = vmatpush.msra.mxu2 %v1415_v23 }
  0x51   :  { %442 = vmatpush.msra.mxu3 %v1420_v24  ;;  %360 = vmatpush.msra.mxu0 %v1427_v25 }
  0x52   :  { %392 = vmatpush.msra.mxu1 %v1432_v26  ;;  %419 = vmatpush.msra.mxu2 %v1439_v27 }
  0x53   :  { %443 = vmatpush.msra.mxu3 %v1444_v28  ;;  %361 = vmatpush.msra.mxu0 %v1451_v29 }
  0x54   :  { %393 = vmatpush.msra.mxu1 %v1456_v30  ;;  %420 = vmatpush.msra.mxu2 %v1463_v31 }
  0x55   :  { %444 = vmatpush.msra.mxu3 %v1468_v32  ;;  %362 = vmatpush.msra.mxu0 %v1475_v33 }
  0x56   :  { %394 = vmatpush.msra.mxu1 %v1480_v34  ;;  %421 = vmatpush.msra.mxu2 %v1487_v35 }
  0x57   :  { %445 = vmatpush.msra.mxu3 %v1492_v36  ;;  %363 = vmatpush.msra.mxu0 %v1499_v37 }
  0x58   :  { %395 = vmatpush.msra.mxu1 %v1504_v38  ;;  %422 = vmatpush.msra.mxu2 %v1511_v39 }
  0x59   :  { %446 = vmatpush.msra.mxu3 %v1516_v40  ;;  %364 = vmatpush.msra.mxu0 %v1523_v41 }
  0x5a   :  { %396 = vmatpush.msra.mxu1 %v1528_v42  ;;  %423 = vmatpush.msra.mxu2 %v1535_v43 }
  0x5b   :  { %447 = vmatpush.msra.mxu3 %v1540_v44  ;;  %365 = vmatpush.msra.mxu0 %v1547_v45 }
  0x5c   :  { %397 = vmatpush.msra.mxu1 %v1552_v46  ;;  %424 = vmatpush.msra.mxu2 %v1557_v47 }
  0x5d   :  { %448 = vmatpush.msra.mxu3 %v1564_v48  ;;  %366 = vmatpush.msra.mxu0 %v1572_v50 }
  0x5e   :  { %398 = vmatpush.msra.mxu1 %v1579_v51  ;;  %425 = vmatpush.msra.mxu2 %v1586_v52 }
  0x5f   :  { %449 = vmatpush.msra.mxu3 %v1593_v53  ;;  %367 = vmatpush.msra.mxu0 %v1598_v54 }
  0x60   :  { %399 = vmatpush.msra.mxu1 %v1604_v55  ;;  %426 = vmatpush.msra.mxu2 %v2765_v56  ;;  %v2768_v55 = vmov 0  }
  0x61   :  { %450 = vmatpush.msra.mxu3 %v1616_v57  ;;  %368 = vmatpush.msra.mxu0 %v1621_v58  ;;  %v1809_v58 = vld [vmem:[%s2636_s1] ss:$0 sm:$0xff]  ;;  %v1838_v57 = vld [vmem:[%s2636_s1 + $0x3] ss:$0 sm:$0xff] }
  0x62   :  { %400 = vmatpush.msra.mxu1 %v1628_v59  ;;  %427 = vmatpush.msra.mxu2 %v2766_v60  ;;  %2769 = vst [vmem:[#allocation24_spill] sm:$0xff] %v1809_v58  ;;  %v1814_v60 = vld [vmem:[%s2636_s1 + $0x1] ss:$0 sm:$0xff] }
  0x63   :  { %451 = vmatpush.msra.mxu3 %v1638_v61  ;;  %369 = vmatpush.msra.mxu0 %v1645_v62  ;;  %2770 = vst [vmem:[#allocation25_spill] sm:$0xff] %v1814_v60 }
  0x64   :  { %401 = vmatpush.msra.mxu1 %v1650_v63  ;;  %428 = vmatpush.msra.mxu2 %v2767_v49  ;;  %v1820_v49 = vld [vmem:[%s2637_s2] ss:$0 sm:$0xff]  ;;  %2774 = vst [vmem:[#allocation29_spill] sm:$0xff] %v1838_v57 }
  0x65   :  { %452 = vmatpush.msra.mxu3 %v1664_v3  ;;  %1082 = vset.pattern.permute.xlu2 %v2768_v55  ;;  %2771 = vst [vmem:[#allocation26_spill] sm:$0xff] %v1820_v49  ;;  %v1826_v3 = vld [vmem:[%s2637_s2 + $0x1] ss:$0 sm:$0xff] }
  0x66   :  { %2772 = vst [vmem:[#allocation27_spill] sm:$0xff] %v1826_v3 }
  0x8c   :  { %v64_v61 = vpop.permute.xlu0 %63 }
  0x8d   :  { %v69_v62 = vmul.f32 %v1809_v58, %v64_v61  ;;  %v120_v55 = vmul.f32 %v1814_v60, %v64_v61  ;;  %v1833_v58 = vld [vmem:[%s2636_s1 + $0x2] ss:$0 sm:$0xff] }
  0x8e   :  { %2773 = vst [vmem:[#allocation28_spill] sm:$0xff] %v1833_v58  ;;  %v171_v52 = vmul.f32 %v1833_v58, %v64_v61 }
  0x8f   :  { %v74_v63 = vadd.f32 %v1820_v49, %v69_v62  ;;  %v125_v59 = vadd.f32 %v1826_v3, %v120_v55  ;;  %v1844_v62 = vld [vmem:[%s2637_s2 + $0x2] ss:$0 sm:$0xff]  ;;  %v219_v55 = vmul.f32 %v1838_v57, %v64_v61  ;;  %v1850_v3 = vld [vmem:[%s2637_s2 + $0x3] ss:$0 sm:$0xff] }
  0x90   :  { %2775 = vst [vmem:[#allocation30_spill] sm:$0xff] %v1844_v62 }
  0xa0   :  { %v57_v60 = vpop.f32.mrf.mxu0  ;;  %v113_v56 = vpop.f32.mrf.mxu1 }
  0xa1   :  { %v75_v54 = vadd.f32 %v74_v63, %v57_v60  ;;  %v126_v53 = vadd.f32 %v125_v59, %v113_v56  ;;  %v176_v59 = vadd.f32 %v1844_v62, %v171_v52  ;;  %v224_v63 = vadd.f32 %v1850_v3, %v219_v55 }
  0xa3   :  { %v76_v49 = vmul.f32 0.5, %v75_v54  ;;  %v127_v51 = vmul.f32 0.5, %v126_v53 }
  0xa5   :  { %1093 = vtanh.f32 %v76_v49 }
  0xa6   :  { %1095 = vtanh.f32 %v127_v51 }
  0xa7   :  { %v164_v56 = vpop.f32.mrf.mxu2  ;;  %v212_v60 = vpop.f32.mrf.mxu3 }
  0xa8   :  { %v177_v58 = vadd.f32 %v176_v59, %v164_v56  ;;  %v225_v50 = vadd.f32 %v224_v63, %v212_v60  ;;  %v2783_v56 = vld [vmem:[#allocation10_spill] sm:$0xff]  ;;  %v2784_v60 = vld [vmem:[#allocation11_spill] sm:$0xff] }
  0xaa   :  { %1097 = vtanh.f32 %v177_v58  ;;  %v226_v48 = vmul.f32 0.5, %v225_v50  ;;  %v2781_v50 = vld [vmem:[#allocation8_spill] sm:$0xff] }
  0xab   :  { %v1094_v61 = vpop.eup %1093 }
  0xac   :  { %v1096_v57 = vpop.eup %1095  ;;  %v78_v47 = vadd.f32 1.0, %v1094_v61  ;;  %1099 = vtanh.f32 %v226_v48  ;;  %v2780_v48 = vld [vmem:[#allocation7_spill] sm:$0xff]  ;;  %v2785_v61 = vld [vmem:[#allocation12_spill] sm:$0xff] }
  0xad   :  { %v129_v46 = vadd.f32 1.0, %v1096_v57  ;;  %v2782_v57 = vld [vmem:[#allocation9_spill] sm:$0xff] }
  0xae   :  { %v79_v45 = vmul.f32 0.5, %v78_v47  ;;  %v2779_v47 = vld [vmem:[#allocation6_spill] sm:$0xff] }
  0xaf   :  { %v130_v54 = vmul.f32 0.5, %v129_v46  ;;  %v2778_v46 = vld [vmem:[#allocation5_spill] sm:$0xff] }
  0xb0   :  { %v1098_v53 = vpop.eup %1097 }
  0xb1   :  { %v230_v49 = vmul.f32 0.0, %v130_v54  ;;  %v231_v51 = vmul.f32 %v1098_v53, %v79_v45  ;;  %v2777_v45 = vld [vmem:[#allocation4_spill] sm:$0xff]  ;;  %v2786_v54 = vld [vmem:[#allocation13_spill] sm:$0xff]  ;;  %v2787_v53 = vld [vmem:[#allocation14_spill] sm:$0xff] }
  0xb2   :  { %v1100_v44 = vpop.eup %1099 }
  0xb3   :  { %v1854_v52 = vadd.f32 %v231_v51, %v230_v49  ;;  %v228_v55 = vadd.f32 1.0, %v1100_v44  ;;  %v2776_v44 = vld [vmem:[#allocation3_spill] sm:$0xff]  ;;  %v2789_v51 = vld [vmem:[#allocation16_spill] sm:$0xff] }
  0xb4   :  { %v2788_v49 = vld [vmem:[#allocation15_spill] sm:$0xff] }
  0xb5   :  { %1101 = vtanh.f32 %v1854_v52  ;;  %v229_v59 = vmul.f32 0.5, %v228_v55  ;;  %v2790_v55 = vld [vmem:[#allocation17_spill] sm:$0xff] }
  0xbb   :  { %v1102_v63 = vpop.eup %1101 }
  0xbc   :  { %v234_v58 = vmul.f32 %v1102_v63, %v229_v59  ;;  %v2791_v59 = vld [vmem:[#allocation18_spill] sm:$0xff]  ;;  %v2792_v63 = vld [vmem:[#allocation19_spill] sm:$0xff] }
  0xbe   :  { %253 = vmatmul.f32.vlgmr.msrb.gmra.mxu0 %v234_v58  ;;  %285 = vmatmul.f32.vlgmr.msrb.gmra.mxu1 %v234_v58 }
  0xbf   :  { %312 = vmatmul.f32.vlgmr.msrb.gmra.mxu2 %v234_v58  ;;  %336 = vmatmul.f32.vlgmr.msrb.gmra.mxu3 %v234_v58  ;;  %v2793_v58 = vld [vmem:[#allocation20_spill] sm:$0xff] }
  0xc0   :  { %471 = vmatpush.msrb.mxu0 %v1285_v0  ;;  %503 = vmatpush.msrb.mxu1 %v1290_v1 }
  0xc1   :  { %530 = vmatpush.msrb.mxu2 %v1295_v2  ;;  %554 = vmatpush.msrb.mxu3 %v1304_v4 }
  0xc2   :  { %472 = vmatpush.msrb.mxu0 %v1309_v5  ;;  %504 = vmatpush.msrb.mxu1 %v1314_v6 }
  0xc3   :  { %531 = vmatpush.msrb.mxu2 %v1321_v7  ;;  %555 = vmatpush.msrb.mxu3 %v1326_v8 }
  0xc4   :  { %473 = vmatpush.msrb.mxu0 %v1331_v9  ;;  %505 = vmatpush.msrb.mxu1 %v1338_v10 }
  0xc5   :  { %532 = vmatpush.msrb.mxu2 %v1343_v11  ;;  %556 = vmatpush.msrb.mxu3 %v1348_v12 }
  0xc6   :  { %474 = vmatpush.msrb.mxu0 %v1355_v13  ;;  %506 = vmatpush.msrb.mxu1 %v1360_v14 }
  0xc7   :  { %533 = vmatpush.msrb.mxu2 %v1367_v15  ;;  %557 = vmatpush.msrb.mxu3 %v1372_v16 }
  0xc8   :  { %475 = vmatpush.msrb.mxu0 %v1379_v17  ;;  %507 = vmatpush.msrb.mxu1 %v1384_v18 }
  0xc9   :  { %534 = vmatpush.msrb.mxu2 %v1391_v19  ;;  %558 = vmatpush.msrb.mxu3 %v1396_v20 }
  0xca   :  { %476 = vmatpush.msrb.mxu0 %v1403_v21  ;;  %508 = vmatpush.msrb.mxu1 %v1408_v22 }
  0xcb   :  { %535 = vmatpush.msrb.mxu2 %v1415_v23  ;;  %559 = vmatpush.msrb.mxu3 %v1420_v24 }
  0xcc   :  { %477 = vmatpush.msrb.mxu0 %v1427_v25  ;;  %509 = vmatpush.msrb.mxu1 %v1432_v26 }
  0xcd   :  { %536 = vmatpush.msrb.mxu2 %v1439_v27  ;;  %560 = vmatpush.msrb.mxu3 %v1444_v28 }
  0xce   :  { %478 = vmatpush.msrb.mxu0 %v1451_v29  ;;  %510 = vmatpush.msrb.mxu1 %v1456_v30 }
  0xcf   :  { %537 = vmatpush.msrb.mxu2 %v1463_v31  ;;  %561 = vmatpush.msrb.mxu3 %v1468_v32 }
  0xd0   :  { %479 = vmatpush.msrb.mxu0 %v1475_v33  ;;  %511 = vmatpush.msrb.mxu1 %v1480_v34 }
  0xd1   :  { %538 = vmatpush.msrb.mxu2 %v1487_v35  ;;  %562 = vmatpush.msrb.mxu3 %v1492_v36 }
  0xd2   :  { %480 = vmatpush.msrb.mxu0 %v1499_v37  ;;  %512 = vmatpush.msrb.mxu1 %v1504_v38 }
  0xd3   :  { %539 = vmatpush.msrb.mxu2 %v1511_v39  ;;  %563 = vmatpush.msrb.mxu3 %v1516_v40 }
  0xd4   :  { %481 = vmatpush.msrb.mxu0 %v1523_v41  ;;  %513 = vmatpush.msrb.mxu1 %v1528_v42 }
  0xd5   :  { %540 = vmatpush.msrb.mxu2 %v1535_v43  ;;  %564 = vmatpush.msrb.mxu3 %v2776_v44 }
  0xd6   :  { %482 = vmatpush.msrb.mxu0 %v2777_v45  ;;  %514 = vmatpush.msrb.mxu1 %v2778_v46  ;;  %v2801_v46 = vld [vmem:[#allocation28_spill] sm:$0xff]  ;;  %v2802_v45 = vld [vmem:[#allocation29_spill] sm:$0xff] }
  0xd7   :  { %541 = vmatpush.msrb.mxu2 %v2779_v47  ;;  %565 = vmatpush.msrb.mxu3 %v2780_v48 }
  0xd8   :  { %483 = vmatpush.msrb.mxu0 %v2781_v50  ;;  %515 = vmatpush.msrb.mxu1 %v2782_v57 }
  0xd9   :  { %542 = vmatpush.msrb.mxu2 %v2783_v56  ;;  %566 = vmatpush.msrb.mxu3 %v2784_v60  ;;  %v2794_v56 = vld [vmem:[#allocation21_spill] sm:$0xff]  ;;  %v2795_v60 = vld [vmem:[#allocation22_spill] sm:$0xff] }
  0xda   :  { %484 = vmatpush.msrb.mxu0 %v2785_v61  ;;  %516 = vmatpush.msrb.mxu1 %v2786_v54  ;;  %v2796_v61 = vld [vmem:[#allocation23_spill] sm:$0xff]  ;;  %v2798_v54 = vld [vmem:[#allocation25_spill] sm:$0xff] }
  0xdb   :  { %543 = vmatpush.msrb.mxu2 %v2787_v53  ;;  %567 = vmatpush.msrb.mxu3 %v2788_v49  ;;  %v1072_v49 = vld [vmem:[%s2635_s0 + $0x10] sm:$0xff] }
  0xdc   :  { %485 = vmatpush.msrb.mxu0 %v2789_v51  ;;  %517 = vmatpush.msrb.mxu1 %v2790_v55  ;;  %v260_v51 = vpop.permute.xlu0 %259  ;;  %v2797_v53 = vld [vmem:[#allocation24_spill] sm:$0xff] }
  0xdd   :  { %544 = vmatpush.msrb.mxu2 %v2791_v59  ;;  %568 = vmatpush.msrb.mxu3 %v2792_v63  ;;  %v262_v55 = vmul.f32 %v2797_v53, %v260_v51  ;;  %v289_v59 = vmul.f32 %v2798_v54, %v260_v51  ;;  %v340_v44 = vmul.f32 %v2802_v45, %v260_v51  ;;  %v1077_v54 = vld [vmem:[%s2635_s0 + $0x38] sm:$0xff] }
  0xde   :  { %486 = vmatpush.msrb.mxu0 %v2793_v58  ;;  %518 = vmatpush.msrb.mxu1 %v2794_v56  ;;  %v1073_v58 = vld [vmem:[%s2635_s0 + $0x18] sm:$0xff]  ;;  %v2799_v56 = vld [vmem:[#allocation26_spill] sm:$0xff] }
  0xdf   :  { %545 = vmatpush.msrb.mxu2 %v2795_v60  ;;  %569 = vmatpush.msrb.mxu3 %v2796_v61  ;;  %v263_v63 = vadd.f32 %v2799_v56, %v262_v55  ;;  %v2800_v60 = vld [vmem:[#allocation27_spill] sm:$0xff] }
  0xe0   :  { %376 = vperm.xlu1 %1081, %v1072_v49   ;;  %v290_v57 = vadd.f32 %v2800_v60, %v289_v59  ;;  %v316_v49 = vmul.f32 %v2801_v46, %v260_v51  ;;  %v341_v59 = vadd.f32 %v1850_v3, %v340_v44 }
  0xe2   :  { %v317_v55 = vadd.f32 %v1844_v62, %v316_v49 }
  0xe8   :  { %493 = vperm.xlu1 %1081, %v1073_v58  }
  0xf0   :  { %961 = vperm.xlu1 %1081, %v1077_v54  }
 0x13b   :  { %v254_v61 = vpop.f32.mrf.mxu0  ;;  %v286_v50 = vpop.f32.mrf.mxu1 }
 0x13c   :  { %v264_v48 = vadd.f32 %v263_v63, %v254_v61  ;;  %v291_v47 = vadd.f32 %v290_v57, %v286_v50 }
 0x13e   :  { %v265_v53 = vmul.f32 0.5, %v264_v48  ;;  %v292_v43 = vmul.f32 0.5, %v291_v47 }
 0x140   :  { %1103 = vtanh.f32 %v265_v53 }
 0x141   :  { %1105 = vtanh.f32 %v292_v43 }
 0x142   :  { %v313_v58 = vpop.f32.mrf.mxu2  ;;  %v337_v61 = vpop.f32.mrf.mxu3 }
 0x143   :  { %v318_v50 = vadd.f32 %v317_v55, %v313_v58  ;;  %v342_v57 = vadd.f32 %v341_v59, %v337_v61 }
 0x145   :  { %1107 = vtanh.f32 %v318_v50  ;;  %v343_v63 = vmul.f32 0.5, %v342_v57 }
 0x146   :  { %v1104_v51 = vpop.eup %1103 }
 0x147   :  { %v1106_v45 = vpop.eup %1105  ;;  %v267_v46 = vadd.f32 1.0, %v1104_v51  ;;  %1109 = vtanh.f32 %v343_v63 }
 0x148   :  { %v294_v60 = vadd.f32 1.0, %v1106_v45 }
 0x149   :  { %v268_v48 = vmul.f32 0.5, %v267_v46 }
 0x14a   :  { %v295_v47 = vmul.f32 0.5, %v294_v60 }
 0x14b   :  { %v1108_v53 = vpop.eup %1107 }
 0x14c   :  { %v347_v43 = vmul.f32 %v295_v47, %v1854_v52  ;;  %v348_v54 = vmul.f32 %v1108_v53, %v268_v48 }
 0x14d   :  { %v1110_v49 = vpop.eup %1109 }
 0x14e   :  { %v1939_v62 = vadd.f32 %v348_v54, %v347_v43  ;;  %v345_v44 = vadd.f32 1.0, %v1110_v49 }
 0x150   :  { %1111 = vtanh.f32 %v1939_v62  ;;  %v346_v55 = vmul.f32 0.5, %v345_v44 }
 0x156   :  { %v1112_v59 = vpop.eup %1111 }
 0x157   :  { %v351_v58 = vmul.f32 %v1112_v59, %v346_v55 }
 0x159   :  { %370 = vmatmul.f32.vlgmr.msra.gmra.mxu0 %v351_v58  ;;  %402 = vmatmul.f32.vlgmr.msra.gmra.mxu1 %v351_v58 }
 0x15a   :  { %429 = vmatmul.f32.vlgmr.msra.gmra.mxu2 %v351_v58  ;;  %453 = vmatmul.f32.vlgmr.msra.gmra.mxu3 %v351_v58 }
 0x15b   :  { %588 = vmatpush.msra.mxu0 %v1285_v0  ;;  %620 = vmatpush.msra.mxu1 %v1290_v1  ;;  %v2803_v0 = vld [vmem:[#allocation2_spill] sm:$0xff]  ;;  %v2804_v1 = vld [vmem:[#allocation3_spill] sm:$0xff] }
 0x15c   :  { %647 = vmatpush.msra.mxu2 %v1295_v2  ;;  %671 = vmatpush.msra.mxu3 %v1304_v4  ;;  %v2805_v2 = vld [vmem:[#allocation4_spill] sm:$0xff]  ;;  %v2806_v4 = vld [vmem:[#allocation5_spill] sm:$0xff] }
 0x15d   :  { %589 = vmatpush.msra.mxu0 %v1309_v5  ;;  %621 = vmatpush.msra.mxu1 %v1314_v6  ;;  %v2807_v5 = vld [vmem:[#allocation6_spill] sm:$0xff]  ;;  %v2808_v6 = vld [vmem:[#allocation7_spill] sm:$0xff] }
 0x15e   :  { %648 = vmatpush.msra.mxu2 %v1321_v7  ;;  %672 = vmatpush.msra.mxu3 %v1326_v8  ;;  %v2809_v7 = vld [vmem:[#allocation8_spill] sm:$0xff]  ;;  %v2810_v8 = vld [vmem:[#allocation9_spill] sm:$0xff] }
 0x15f   :  { %590 = vmatpush.msra.mxu0 %v1331_v9  ;;  %622 = vmatpush.msra.mxu1 %v1338_v10  ;;  %v2811_v9 = vld [vmem:[#allocation10_spill] sm:$0xff]  ;;  %v2812_v10 = vld [vmem:[#allocation11_spill] sm:$0xff] }
 0x160   :  { %649 = vmatpush.msra.mxu2 %v1343_v11  ;;  %673 = vmatpush.msra.mxu3 %v1348_v12  ;;  %v2813_v11 = vld [vmem:[#allocation12_spill] sm:$0xff]  ;;  %v2814_v12 = vld [vmem:[#allocation13_spill] sm:$0xff] }
 0x161   :  { %591 = vmatpush.msra.mxu0 %v1355_v13  ;;  %623 = vmatpush.msra.mxu1 %v1360_v14  ;;  %v2815_v13 = vld [vmem:[#allocation14_spill] sm:$0xff]  ;;  %v2816_v14 = vld [vmem:[#allocation15_spill] sm:$0xff] }
 0x162   :  { %650 = vmatpush.msra.mxu2 %v1367_v15  ;;  %674 = vmatpush.msra.mxu3 %v1372_v16  ;;  %v2817_v15 = vld [vmem:[#allocation16_spill] sm:$0xff]  ;;  %v2818_v16 = vld [vmem:[#allocation17_spill] sm:$0xff] }
 0x163   :  { %592 = vmatpush.msra.mxu0 %v1379_v17  ;;  %624 = vmatpush.msra.mxu1 %v1384_v18  ;;  %v2819_v17 = vld [vmem:[#allocation18_spill] sm:$0xff]  ;;  %v2820_v18 = vld [vmem:[#allocation19_spill] sm:$0xff] }
 0x164   :  { %651 = vmatpush.msra.mxu2 %v1391_v19  ;;  %675 = vmatpush.msra.mxu3 %v1396_v20  ;;  %v2821_v19 = vld [vmem:[#allocation20_spill] sm:$0xff]  ;;  %v2822_v20 = vld [vmem:[#allocation21_spill] sm:$0xff] }
 0x165   :  { %593 = vmatpush.msra.mxu0 %v1403_v21  ;;  %625 = vmatpush.msra.mxu1 %v1408_v22  ;;  %v2823_v21 = vld [vmem:[#allocation22_spill] sm:$0xff]  ;;  %v2824_v22 = vld [vmem:[#allocation23_spill] sm:$0xff] }
 0x166   :  { %652 = vmatpush.msra.mxu2 %v1415_v23  ;;  %676 = vmatpush.msra.mxu3 %v1420_v24  ;;  %v377_v23 = vpop.permute.xlu1 %376  ;;  %v2825_v24 = vld [vmem:[#allocation24_spill] sm:$0xff] }
 0x167   :  { %594 = vmatpush.msra.mxu0 %v1427_v25  ;;  %626 = vmatpush.msra.mxu1 %v1432_v26  ;;  %v379_v25 = vmul.f32 %v2825_v24, %v377_v23  ;;  %v2826_v26 = vld [vmem:[#allocation25_spill] sm:$0xff] }
 0x168   :  { %653 = vmatpush.msra.mxu2 %v1439_v27  ;;  %677 = vmatpush.msra.mxu3 %v1444_v28  ;;  %v406_v27 = vmul.f32 %v2826_v26, %v377_v23 }
 0x169   :  { %595 = vmatpush.msra.mxu0 %v1451_v29  ;;  %627 = vmatpush.msra.mxu1 %v1456_v30  ;;  %v380_v28 = vadd.f32 %v2799_v56, %v379_v25  ;;  %v2827_v29 = vld [vmem:[#allocation27_spill] sm:$0xff] }
 0x16a   :  { %654 = vmatpush.msra.mxu2 %v1463_v31  ;;  %678 = vmatpush.msra.mxu3 %v1468_v32  ;;  %v407_v30 = vadd.f32 %v2827_v29, %v406_v27  ;;  %v2051_v25 = vld [vmem:[%s2634_s3 + $0x1c8] sm:$0xff]  ;;  %v2057_v27 = vld [vmem:[%s2634_s3 + $0x1d0] sm:$0xff] }
 0x16b   :  { %596 = vmatpush.msra.mxu0 %v1475_v33  ;;  %628 = vmatpush.msra.mxu1 %v1480_v34 }
 0x16c   :  { %655 = vmatpush.msra.mxu2 %v1487_v35  ;;  %679 = vmatpush.msra.mxu3 %v1492_v36  ;;  %v2828_v35 = vld [vmem:[#allocation28_spill] sm:$0xff] }
 0x16d   :  { %597 = vmatpush.msra.mxu0 %v1499_v37  ;;  %629 = vmatpush.msra.mxu1 %v1504_v38  ;;  %v433_v36 = vmul.f32 %v2828_v35, %v377_v23  ;;  %v2829_v37 = vld [vmem:[#allocation29_spill] sm:$0xff] }
 0x16e   :  { %656 = vmatpush.msra.mxu2 %v1511_v39  ;;  %680 = vmatpush.msra.mxu3 %v1516_v40  ;;  %v457_v38 = vmul.f32 %v2829_v37, %v377_v23  ;;  %v2045_v23 = vld [vmem:[%s2634_s3 + $0x1c0] sm:$0xff] }
 0x16f   :  { %598 = vmatpush.msra.mxu0 %v1523_v41  ;;  %630 = vmatpush.msra.mxu1 %v1528_v42  ;;  %v2830_v41 = vld [vmem:[#allocation30_spill] sm:$0xff] }
 0x170   :  { %657 = vmatpush.msra.mxu2 %v2803_v0  ;;  %681 = vmatpush.msra.mxu3 %v2804_v1  ;;  %v434_v42 = vadd.f32 %v2830_v41, %v433_v36  ;;  %v458_v52 = vadd.f32 %v1850_v3, %v457_v38  ;;  %v2099_v36 = vld [vmem:[%s2634_s3 + $0x188] sm:$0xff]  ;;  %v2105_v38 = vld [vmem:[%s2634_s3 + $0x190] sm:$0xff] }
 0x171   :  { %599 = vmatpush.msra.mxu0 %v2805_v2  ;;  %631 = vmatpush.msra.mxu1 %v2806_v4  ;;  %v2021_v2 = vld [vmem:[%s2634_s3 + $0x1e0] sm:$0xff]  ;;  %v2033_v4 = vld [vmem:[%s2634_s3 + $0x1f0] sm:$0xff] }
 0x172   :  { %658 = vmatpush.msra.mxu2 %v2807_v5  ;;  %682 = vmatpush.msra.mxu3 %v2808_v6  ;;  %v2039_v5 = vld [vmem:[%s2634_s3 + $0x1f8] sm:$0xff] }
 0x173   :  { %600 = vmatpush.msra.mxu0 %v2809_v7  ;;  %632 = vmatpush.msra.mxu1 %v2810_v8 }
 0x174   :  { %659 = vmatpush.msra.mxu2 %v2811_v9  ;;  %683 = vmatpush.msra.mxu3 %v2812_v10 }
 0x175   :  { %601 = vmatpush.msra.mxu0 %v2813_v11  ;;  %633 = vmatpush.msra.mxu1 %v2814_v12 }
 0x176   :  { %660 = vmatpush.msra.mxu2 %v2815_v13  ;;  %684 = vmatpush.msra.mxu3 %v2816_v14 }
 0x177   :  { %602 = vmatpush.msra.mxu0 %v2817_v15  ;;  %634 = vmatpush.msra.mxu1 %v2818_v16 }
 0x178   :  { %661 = vmatpush.msra.mxu2 %v2819_v17  ;;  %685 = vmatpush.msra.mxu3 %v2820_v18 }
 0x179   :  { %603 = vmatpush.msra.mxu0 %v2821_v19  ;;  %635 = vmatpush.msra.mxu1 %v2822_v20 }
 0x17a   :  { %662 = vmatpush.msra.mxu2 %v2823_v21  ;;  %686 = vmatpush.msra.mxu3 %v2824_v22 }
 0x1d6   :  { %v371_v31 = vpop.f32.mrf.mxu0  ;;  %v403_v32 = vpop.f32.mrf.mxu1 }
 0x1d7   :  { %v381_v33 = vadd.f32 %v380_v28, %v371_v31  ;;  %v408_v34 = vadd.f32 %v407_v30, %v403_v32  ;;  %v2063_v28 = vld [vmem:[%s2634_s3 + $0x1d8] sm:$0xff]  ;;  %v2069_v30 = vld [vmem:[%s2634_s3 + $0x1a0] sm:$0xff]  ;;  %v2075_v31 = vld [vmem:[%s2634_s3 + $0x1a8] sm:$0xff] }
 0x1d8   :  { %v2081_v32 = vld [vmem:[%s2634_s3 + $0x1b0] sm:$0xff] }
 0x1d9   :  { %v382_v39 = vmul.f32 0.5, %v381_v33  ;;  %v409_v40 = vmul.f32 0.5, %v408_v34  ;;  %v2087_v33 = vld [vmem:[%s2634_s3 + $0x1b8] sm:$0xff]  ;;  %v2093_v34 = vld [vmem:[%s2634_s3 + $0x180] sm:$0xff] }
 0x1db   :  { %1113 = vtanh.f32 %v382_v39  ;;  %v2111_v39 = vld [vmem:[%s2634_s3 + $0x198] sm:$0xff] }
 0x1dc   :  { %1115 = vtanh.f32 %v409_v40  ;;  %v2117_v40 = vld [vmem:[%s2634_s3 + $0x160] sm:$0xff] }
 0x1dd   :  { %v430_v45 = vpop.f32.mrf.mxu2  ;;  %v454_v46 = vpop.f32.mrf.mxu3 }
 0x1de   :  { %v435_v60 = vadd.f32 %v434_v42, %v430_v45  ;;  %v459_v61 = vadd.f32 %v458_v52, %v454_v46  ;;  %v2123_v42 = vld [vmem:[%s2634_s3 + $0x168] sm:$0xff]  ;;  %v2129_v52 = vld [vmem:[%s2634_s3 + $0x170] sm:$0xff]  ;;  %v2135_v45 = vld [vmem:[%s2634_s3 + $0x178] sm:$0xff] }
 0x1df   :  { %v2141_v46 = vld [vmem:[%s2634_s3 + $0x140] sm:$0xff] }
 0x1e0   :  { %1117 = vtanh.f32 %v435_v60  ;;  %v460_v50 = vmul.f32 0.5, %v459_v61  ;;  %v2147_v60 = vld [vmem:[%s2634_s3 + $0x148] sm:$0xff]  ;;  %v2153_v61 = vld [vmem:[%s2634_s3 + $0x150] sm:$0xff] }
 0x1e1   :  { %v1114_v57 = vpop.eup %1113 }
 0x1e2   :  { %v1116_v63 = vpop.eup %1115  ;;  %v384_v51 = vadd.f32 1.0, %v1114_v57  ;;  %1119 = vtanh.f32 %v460_v50  ;;  %v2159_v50 = vld [vmem:[%s2634_s3 + $0x158] sm:$0xff]  ;;  %v2165_v57 = vld [vmem:[%s2634_s3 + $0x120] sm:$0xff] }
 0x1e3   :  { %v411_v48 = vadd.f32 1.0, %v1116_v63  ;;  %v2171_v63 = vld [vmem:[%s2634_s3 + $0x128] sm:$0xff] }
 0x1e4   :  { %v385_v47 = vmul.f32 0.5, %v384_v51  ;;  %v2177_v51 = vld [vmem:[%s2634_s3 + $0x130] sm:$0xff] }
 0x1e5   :  { %v412_v53 = vmul.f32 0.5, %v411_v48  ;;  %v2183_v48 = vld [vmem:[%s2634_s3 + $0x138] sm:$0xff] }
 0x1e6   :  { %v1118_v43 = vpop.eup %1117 }
 0x1e7   :  { %v464_v54 = vmul.f32 %v412_v53, %v1939_v62  ;;  %v465_v49 = vmul.f32 %v1118_v43, %v385_v47  ;;  %v2027_v62 = vld [vmem:[%s2634_s3 + $0x1e8] sm:$0xff]  ;;  %v2189_v47 = vld [vmem:[%s2634_s3 + $0x100] sm:$0xff]  ;;  %v2201_v43 = vld [vmem:[%s2634_s3 + $0x110] sm:$0xff] }
 0x1e8   :  { %v1120_v44 = vpop.eup %1119  ;;  %v2195_v53 = vld [vmem:[%s2634_s3 + $0x108] sm:$0xff] }
 0x1e9   :  { %v2015_v55 = vadd.f32 %v465_v49, %v464_v54  ;;  %v462_v59 = vadd.f32 1.0, %v1120_v44  ;;  %v2207_v54 = vld [vmem:[%s2634_s3 + $0x118] sm:$0xff]  ;;  %v2213_v49 = vld [vmem:[%s2634_s3 + $0xe0] sm:$0xff]  ;;  %v2219_v44 = vld [vmem:[%s2634_s3 + $0xe8] sm:$0xff] }
 0x1eb   :  { %1121 = vtanh.f32 %v2015_v55  ;;  %v463_v58 = vmul.f32 0.5, %v462_v59  ;;  %v2225_v59 = vld [vmem:[%s2634_s3 + $0xf0] sm:$0xff] }
 0x1ec   :  { %2831 = vst [vmem:[#allocation26_spill] sm:$0xff] %v2225_v59 }
 0x1f1   :  { %v1122_v0 = vpop.eup %1121 }
 0x1f2   :  { %v468_v1 = vmul.f32 %v1122_v0, %v463_v58  ;;  %v2231_v58 = vld [vmem:[%s2634_s3 + $0xf8] sm:$0xff]  ;;  %v2237_v0 = vld [vmem:[%s2634_s3 + $0xc0] sm:$0xff] }
 0x1f3   :  { %2832 = vst [vmem:[#allocation2_spill] sm:$0xff] %v2231_v58 }
 0x1f4   :  { %487 = vmatmul.f32.vlgmr.msrb.gmra.mxu0 %v468_v1  ;;  %519 = vmatmul.f32.vlgmr.msrb.gmra.mxu1 %v468_v1  ;;  %2833 = vst [vmem:[#allocation3_spill] sm:$0xff] %v2237_v0 }
 0x1f5   :  { %546 = vmatmul.f32.vlgmr.msrb.gmra.mxu2 %v468_v1  ;;  %570 = vmatmul.f32.vlgmr.msrb.gmra.mxu3 %v468_v1  ;;  %v2243_v1 = vld [vmem:[%s2634_s3 + $0xc8] sm:$0xff] }
 0x1f6   :  { %705 = vmatpush.msrb.mxu0 %v2021_v2  ;;  %737 = vmatpush.msrb.mxu1 %v2027_v62  ;;  %2834 = vst [vmem:[#allocation4_spill] sm:$0xff] %v2243_v1 }
 0x1f7   :  { %764 = vmatpush.msrb.mxu2 %v2033_v4  ;;  %788 = vmatpush.msrb.mxu3 %v2039_v5 }
 0x1f8   :  { %706 = vmatpush.msrb.mxu0 %v2045_v23  ;;  %738 = vmatpush.msrb.mxu1 %v2051_v25 }
 0x1f9   :  { %765 = vmatpush.msrb.mxu2 %v2057_v27  ;;  %789 = vmatpush.msrb.mxu3 %v2063_v28 }
 0x1fa   :  { %707 = vmatpush.msrb.mxu0 %v2069_v30  ;;  %739 = vmatpush.msrb.mxu1 %v2075_v31 }
 0x1fb   :  { %766 = vmatpush.msrb.mxu2 %v2081_v32  ;;  %790 = vmatpush.msrb.mxu3 %v2087_v33 }
 0x1fc   :  { %708 = vmatpush.msrb.mxu0 %v2093_v34  ;;  %740 = vmatpush.msrb.mxu1 %v2099_v36 }
 0x1fd   :  { %767 = vmatpush.msrb.mxu2 %v2105_v38  ;;  %791 = vmatpush.msrb.mxu3 %v2111_v39 }
 0x1fe   :  { %709 = vmatpush.msrb.mxu0 %v2117_v40  ;;  %741 = vmatpush.msrb.mxu1 %v2123_v42 }
 0x1ff   :  { %768 = vmatpush.msrb.mxu2 %v2129_v52  ;;  %792 = vmatpush.msrb.mxu3 %v2135_v45 }
 0x200   :  { %710 = vmatpush.msrb.mxu0 %v2141_v46  ;;  %742 = vmatpush.msrb.mxu1 %v2147_v60 }
 0x201   :  { %769 = vmatpush.msrb.mxu2 %v2153_v61  ;;  %793 = vmatpush.msrb.mxu3 %v2159_v50 }
 0x202   :  { %711 = vmatpush.msrb.mxu0 %v2165_v57  ;;  %743 = vmatpush.msrb.mxu1 %v2171_v63 }
 0x203   :  { %770 = vmatpush.msrb.mxu2 %v2177_v51  ;;  %794 = vmatpush.msrb.mxu3 %v2183_v48 }
 0x204   :  { %712 = vmatpush.msrb.mxu0 %v2189_v47  ;;  %744 = vmatpush.msrb.mxu1 %v2195_v53 }
 0x205   :  { %771 = vmatpush.msrb.mxu2 %v2201_v43  ;;  %795 = vmatpush.msrb.mxu3 %v2207_v54 }
 0x206   :  { %713 = vmatpush.msrb.mxu0 %v2213_v49  ;;  %745 = vmatpush.msrb.mxu1 %v2219_v44 }
 0x207   :  { %772 = vmatpush.msrb.mxu2 %v2225_v59  ;;  %796 = vmatpush.msrb.mxu3 %v2231_v58  ;;  %v2249_v59 = vld [vmem:[%s2634_s3 + $0xd0] sm:$0xff]  ;;  %v2255_v58 = vld [vmem:[%s2634_s3 + $0xd8] sm:$0xff] }
 0x208   :  { %714 = vmatpush.msrb.mxu0 %v2237_v0  ;;  %746 = vmatpush.msrb.mxu1 %v2243_v1  ;;  %2835 = vst [vmem:[#allocation5_spill] sm:$0xff] %v2249_v59  ;;  %v2261_v0 = vld [vmem:[%s2634_s3 + $0xa0] sm:$0xff]  ;;  %v2267_v1 = vld [vmem:[%s2634_s3 + $0xa8] sm:$0xff] }
 0x209   :  { %773 = vmatpush.msrb.mxu2 %v2249_v59  ;;  %2836 = vst [vmem:[#allocation6_spill] sm:$0xff] %v2255_v58  ;;  %797 = vmatpush.msrb.mxu3 %v2255_v58  ;;  %v2273_v59 = vld [vmem:[%s2634_s3 + $0xb0] sm:$0xff]  ;;  %v2279_v58 = vld [vmem:[%s2634_s3 + $0xb8] sm:$0xff] }
 0x20a   :  { %2837 = vst [vmem:[#allocation7_spill] sm:$0xff] %v2261_v0  ;;  %715 = vmatpush.msrb.mxu0 %v2261_v0  ;;  %747 = vmatpush.msrb.mxu1 %v2267_v1  ;;  %v2285_v0 = vld [vmem:[%s2634_s3 + $0x80] sm:$0xff] }
 0x20b   :  { %2838 = vst [vmem:[#allocation8_spill] sm:$0xff] %v2267_v1  ;;  %774 = vmatpush.msrb.mxu2 %v2273_v59  ;;  %798 = vmatpush.msrb.mxu3 %v2279_v58  ;;  %v2291_v1 = vld [vmem:[%s2634_s3 + $0x88] sm:$0xff] }
 0x20c   :  { %2839 = vst [vmem:[#allocation9_spill] sm:$0xff] %v2273_v59  ;;  %716 = vmatpush.msrb.mxu0 %v2285_v0  ;;  %748 = vmatpush.msrb.mxu1 %v2291_v1  ;;  %v2297_v59 = vld [vmem:[%s2634_s3 + $0x90] sm:$0xff] }
 0x20d   :  { %2840 = vst [vmem:[#allocation10_spill] sm:$0xff] %v2279_v58  ;;  %775 = vmatpush.msrb.mxu2 %v2297_v59  ;;  %799 = vmatpush.msrb.mxu3 %v2808_v6  ;;  %v494_v6 = vpop.permute.xlu1 %493 }
 0x20e   :  { %2841 = vst [vmem:[#allocation11_spill] sm:$0xff] %v2285_v0  ;;  %717 = vmatpush.msrb.mxu0 %v2809_v7  ;;  %749 = vmatpush.msrb.mxu1 %v2810_v8  ;;  %v496_v7 = vmul.f32 %v2825_v24, %v494_v6  ;;  %v523_v8 = vmul.f32 %v2826_v26, %v494_v6 }
 0x20f   :  { %2842 = vst [vmem:[#allocation12_spill] sm:$0xff] %v2291_v1  ;;  %776 = vmatpush.msrb.mxu2 %v2811_v9  ;;  %800 = vmatpush.msrb.mxu3 %v2812_v10 }
 0x210   :  { %2843 = vst [vmem:[#allocation13_spill] sm:$0xff] %v2297_v59  ;;  %718 = vmatpush.msrb.mxu0 %v2813_v11  ;;  %750 = vmatpush.msrb.mxu1 %v2814_v12  ;;  %v497_v9 = vadd.f32 %v2799_v56, %v496_v7  ;;  %v524_v10 = vadd.f32 %v2827_v29, %v523_v8  ;;  %v1074_v11 = vld [vmem:[%s2635_s0 + $0x20] sm:$0xff] }
 0x211   :  { %777 = vmatpush.msrb.mxu2 %v2815_v13  ;;  %801 = vmatpush.msrb.mxu3 %v2816_v14 }
 0x212   :  { %719 = vmatpush.msrb.mxu0 %v2817_v15  ;;  %751 = vmatpush.msrb.mxu1 %v2818_v16  ;;  %v550_v16 = vmul.f32 %v2828_v35, %v494_v6 }
 0x213   :  { %778 = vmatpush.msrb.mxu2 %v2819_v17  ;;  %802 = vmatpush.msrb.mxu3 %v2820_v18  ;;  %v574_v17 = vmul.f32 %v2829_v37, %v494_v6 }
 0x214   :  { %720 = vmatpush.msrb.mxu0 %v2821_v19  ;;  %752 = vmatpush.msrb.mxu1 %v2822_v20  ;;  %v1075_v20 = vld [vmem:[%s2635_s0 + $0x28] sm:$0xff] }
 0x215   :  { %779 = vmatpush.msrb.mxu2 %v2823_v21  ;;  %803 = vmatpush.msrb.mxu3 %v2824_v22  ;;  %v551_v21 = vadd.f32 %v2830_v41, %v550_v16  ;;  %v575_v22 = vadd.f32 %v1850_v3, %v574_v17 }
 0x216   :  { %610 = vperm.xlu2 %1082, %v1074_v11  }
 0x21e   :  { %727 = vperm.xlu2 %1082, %v1075_v20  }
 0x271   :  { %v488_v12 = vpop.f32.mrf.mxu0  ;;  %v520_v13 = vpop.f32.mrf.mxu1 }
 0x272   :  { %v498_v14 = vadd.f32 %v497_v9, %v488_v12  ;;  %v525_v15 = vadd.f32 %v524_v10, %v520_v13 }
 0x274   :  { %v499_v18 = vmul.f32 0.5, %v498_v14  ;;  %v526_v19 = vmul.f32 0.5, %v525_v15 }
 0x276   :  { %1123 = vtanh.f32 %v499_v18 }
 0x277   :  { %1125 = vtanh.f32 %v526_v19 }
 0x278   :  { %v547_v7 = vpop.f32.mrf.mxu2  ;;  %v571_v8 = vpop.f32.mrf.mxu3 }
 0x279   :  { %v552_v9 = vadd.f32 %v551_v21, %v547_v7  ;;  %v576_v10 = vadd.f32 %v575_v22, %v571_v8  ;;  %v2847_v8 = vld [vmem:[#allocation4_spill] sm:$0xff] }
 0x27b   :  { %1127 = vtanh.f32 %v552_v9  ;;  %v577_v11 = vmul.f32 0.5, %v576_v10  ;;  %v2848_v9 = vld [vmem:[#allocation5_spill] sm:$0xff]  ;;  %v2849_v10 = vld [vmem:[#allocation6_spill] sm:$0xff] }
 0x27c   :  { %v1124_v6 = vpop.eup %1123 }
 0x27d   :  { %v1126_v12 = vpop.eup %1125  ;;  %v501_v13 = vadd.f32 1.0, %v1124_v6  ;;  %1129 = vtanh.f32 %v577_v11  ;;  %v2850_v11 = vld [vmem:[#allocation7_spill] sm:$0xff]  ;;  %v2851_v6 = vld [vmem:[#allocation8_spill] sm:$0xff] }
 0x27e   :  { %v528_v14 = vadd.f32 1.0, %v1126_v12  ;;  %v2852_v12 = vld [vmem:[#allocation9_spill] sm:$0xff] }
 0x27f   :  { %v502_v15 = vmul.f32 0.5, %v501_v13  ;;  %v2385_v13 = vld [vmem:[%s2634_s3 + $0x98] sm:$0xff] }
 0x280   :  { %v529_v18 = vmul.f32 0.5, %v528_v14  ;;  %2853 = vst [vmem:[#allocation14_spill] sm:$0xff] %v2385_v13  ;;  %v2391_v14 = vld [vmem:[%s2634_s3 + $0x60] sm:$0xff] }
 0x281   :  { %v1128_v37 = vpop.eup %1127  ;;  %2854 = vst [vmem:[#allocation15_spill] sm:$0xff] %v2391_v14 }
 0x282   :  { %v581_v19 = vmul.f32 %v529_v18, %v2015_v55  ;;  %v582_v16 = vmul.f32 %v1128_v37, %v502_v15  ;;  %v2844_v37 = vld [vmem:[#allocation26_spill] sm:$0xff]  ;;  %v2846_v55 = vld [vmem:[#allocation3_spill] sm:$0xff]  ;;  %v2403_v18 = vld [vmem:[%s2634_s3 + $0x70] sm:$0xff] }
 0x283   :  { %v1130_v41 = vpop.eup %1129  ;;  %v2397_v15 = vld [vmem:[%s2634_s3 + $0x68] sm:$0xff]  ;;  %2856 = vst [vmem:[#allocation17_spill] sm:$0xff] %v2403_v18 }
 0x284   :  { %v2332_v17 = vadd.f32 %v582_v16, %v581_v19  ;;  %v579_v21 = vadd.f32 1.0, %v1130_v41  ;;  %v2845_v41 = vld [vmem:[#allocation2_spill] sm:$0xff]  ;;  %2855 = vst [vmem:[#allocation16_spill] sm:$0xff] %v2397_v15  ;;  %v2409_v19 = vld [vmem:[%s2634_s3 + $0x78] sm:$0xff] }
 0x285   :  { %2857 = vst [vmem:[#allocation18_spill] sm:$0xff] %v2409_v19  ;;  %v2415_v16 = vld [vmem:[%s2634_s3 + $0x40] sm:$0xff] }
 0x286   :  { %1131 = vtanh.f32 %v2332_v17  ;;  %v580_v20 = vmul.f32 0.5, %v579_v21  ;;  %2858 = vst [vmem:[#allocation19_spill] sm:$0xff] %v2415_v16  ;;  %v2421_v21 = vld [vmem:[%s2634_s3 + $0x48] sm:$0xff] }
 0x287   :  { %2859 = vst [vmem:[#allocation20_spill] sm:$0xff] %v2421_v21 }
 0x28c   :  { %v1132_v22 = vpop.eup %1131 }
 0x28d   :  { %v585_v7 = vmul.f32 %v1132_v22, %v580_v20  ;;  %v2427_v20 = vld [vmem:[%s2634_s3 + $0x50] sm:$0xff]  ;;  %v2433_v22 = vld [vmem:[%s2634_s3 + $0x58] sm:$0xff] }
 0x28e   :  { %2860 = vst [vmem:[#allocation21_spill] sm:$0xff] %v2427_v20 }
 0x28f   :  { %604 = vmatmul.f32.vlgmr.msra.gmra.mxu0 %v585_v7  ;;  %636 = vmatmul.f32.vlgmr.msra.gmra.mxu1 %v585_v7  ;;  %2861 = vst [vmem:[#allocation22_spill] sm:$0xff] %v2433_v22 }
 0x290   :  { %663 = vmatmul.f32.vlgmr.msra.gmra.mxu2 %v585_v7  ;;  %687 = vmatmul.f32.vlgmr.msra.gmra.mxu3 %v585_v7  ;;  %v2439_v7 = vld [vmem:[%s2634_s3 + $0x20] sm:$0xff] }
 0x291   :  { %822 = vmatpush.msra.mxu0 %v2021_v2  ;;  %854 = vmatpush.msra.mxu1 %v2027_v62  ;;  %2862 = vst [vmem:[#allocation23_spill] sm:$0xff] %v2439_v7 }
 0x292   :  { %881 = vmatpush.msra.mxu2 %v2033_v4  ;;  %905 = vmatpush.msra.mxu3 %v2039_v5 }
 0x293   :  { %823 = vmatpush.msra.mxu0 %v2045_v23  ;;  %855 = vmatpush.msra.mxu1 %v2051_v25 }
 0x294   :  { %882 = vmatpush.msra.mxu2 %v2057_v27  ;;  %906 = vmatpush.msra.mxu3 %v2063_v28 }
 0x295   :  { %824 = vmatpush.msra.mxu0 %v2069_v30  ;;  %856 = vmatpush.msra.mxu1 %v2075_v31 }
 0x296   :  { %883 = vmatpush.msra.mxu2 %v2081_v32  ;;  %907 = vmatpush.msra.mxu3 %v2087_v33 }
 0x297   :  { %825 = vmatpush.msra.mxu0 %v2093_v34  ;;  %857 = vmatpush.msra.mxu1 %v2099_v36 }
 0x298   :  { %884 = vmatpush.msra.mxu2 %v2105_v38  ;;  %908 = vmatpush.msra.mxu3 %v2111_v39 }
 0x299   :  { %826 = vmatpush.msra.mxu0 %v2117_v40  ;;  %858 = vmatpush.msra.mxu1 %v2123_v42 }
 0x29a   :  { %885 = vmatpush.msra.mxu2 %v2129_v52  ;;  %909 = vmatpush.msra.mxu3 %v2135_v45 }
 0x29b   :  { %827 = vmatpush.msra.mxu0 %v2141_v46  ;;  %859 = vmatpush.msra.mxu1 %v2147_v60 }
 0x29c   :  { %886 = vmatpush.msra.mxu2 %v2153_v61  ;;  %910 = vmatpush.msra.mxu3 %v2159_v50 }
 0x29d   :  { %828 = vmatpush.msra.mxu0 %v2165_v57  ;;  %860 = vmatpush.msra.mxu1 %v2171_v63 }
 0x29e   :  { %887 = vmatpush.msra.mxu2 %v2177_v51  ;;  %911 = vmatpush.msra.mxu3 %v2183_v48 }
 0x29f   :  { %829 = vmatpush.msra.mxu0 %v2189_v47  ;;  %861 = vmatpush.msra.mxu1 %v2195_v53 }
 0x2a0   :  { %888 = vmatpush.msra.mxu2 %v2201_v43  ;;  %912 = vmatpush.msra.mxu3 %v2207_v54 }
 0x2a1   :  { %830 = vmatpush.msra.mxu0 %v2213_v49  ;;  %862 = vmatpush.msra.mxu1 %v2219_v44 }
 0x2a2   :  { %889 = vmatpush.msra.mxu2 %v2844_v37  ;;  %913 = vmatpush.msra.mxu3 %v2845_v41 }
 0x2a3   :  { %831 = vmatpush.msra.mxu0 %v2846_v55  ;;  %863 = vmatpush.msra.mxu1 %v2847_v8 }
 0x2a4   :  { %890 = vmatpush.msra.mxu2 %v2848_v9  ;;  %914 = vmatpush.msra.mxu3 %v2849_v10 }
 0x2a5   :  { %832 = vmatpush.msra.mxu0 %v2850_v11  ;;  %864 = vmatpush.msra.mxu1 %v2851_v6 }
 0x2a6   :  { %891 = vmatpush.msra.mxu2 %v2852_v12  ;;  %915 = vmatpush.msra.mxu3 %v2279_v58 }
 0x2a7   :  { %833 = vmatpush.msra.mxu0 %v2285_v0  ;;  %865 = vmatpush.msra.mxu1 %v2291_v1  ;;  %v2870_v1 = vld [vmem:[#allocation29_spill] sm:$0xff] }
 0x2a8   :  { %892 = vmatpush.msra.mxu2 %v2297_v59  ;;  %916 = vmatpush.msra.mxu3 %v2385_v13 }
 0x2a9   :  { %834 = vmatpush.msra.mxu0 %v2391_v14  ;;  %866 = vmatpush.msra.mxu1 %v2397_v15 }
 0x2aa   :  { %893 = vmatpush.msra.mxu2 %v2403_v18  ;;  %917 = vmatpush.msra.mxu3 %v2409_v19 }
 0x2ab   :  { %835 = vmatpush.msra.mxu0 %v2415_v16  ;;  %867 = vmatpush.msra.mxu1 %v2421_v21  ;;  %v2445_v21 = vld [vmem:[%s2634_s3 + $0x28] sm:$0xff] }
 0x2ac   :  { %894 = vmatpush.msra.mxu2 %v2427_v20  ;;  %918 = vmatpush.msra.mxu3 %v2433_v22  ;;  %2863 = vst [vmem:[#allocation24_spill] sm:$0xff] %v2445_v21  ;;  %v2451_v20 = vld [vmem:[%s2634_s3 + $0x30] sm:$0xff]  ;;  %v2457_v22 = vld [vmem:[%s2634_s3 + $0x38] sm:$0xff] }
 0x2ad   :  { %836 = vmatpush.msra.mxu0 %v2439_v7  ;;  %868 = vmatpush.msra.mxu1 %v2445_v21  ;;  %2864 = vst [vmem:[#allocation25_spill] sm:$0xff] %v2451_v20  ;;  %v2463_v7 = vld [vmem:[%s2634_s3] sm:$0xff]  ;;  %v2469_v21 = vld [vmem:[%s2634_s3 + $0x8] sm:$0xff] }
 0x2ae   :  { %895 = vmatpush.msra.mxu2 %v2451_v20  ;;  %2865 = vst [vmem:[#allocation27_spill] sm:$0xff] %v2457_v22  ;;  %919 = vmatpush.msra.mxu3 %v2457_v22  ;;  %v2475_v20 = vld [vmem:[%s2634_s3 + $0x10] sm:$0xff]  ;;  %v2481_v22 = vld [vmem:[%s2634_s3 + $0x18] sm:$0xff] }
 0x2af   :  { %2866 = vst [vmem:[#allocation28_spill] sm:$0xff] %v2463_v7  ;;  %837 = vmatpush.msra.mxu0 %v2463_v7  ;;  %869 = vmatpush.msra.mxu1 %v2469_v21  ;;  %v611_v7 = vpop.permute.xlu2 %610 }
 0x2b0   :  { %2867 = vst [vmem:[#allocation26_spill] sm:$0xff] %v2469_v21  ;;  %896 = vmatpush.msra.mxu2 %v2475_v20  ;;  %920 = vmatpush.msra.mxu3 %v2481_v22  ;;  %v613_v16 = vmul.f32 %v2825_v24, %v611_v7  ;;  %v640_v19 = vmul.f32 %v2826_v26, %v611_v7 }
 0x2b1   :  { %2868 = vst [vmem:[#allocation2_spill] sm:$0xff] %v2475_v20  ;;  %v667_v59 = vmul.f32 %v2828_v35, %v611_v7  ;;  %v691_v0 = vmul.f32 %v2870_v1, %v611_v7  ;;  %v2599_v7 = vld [vmem:[%s2637_s2 + $0x2] ss:$0 sm:$0xff] }
 0x2b2   :  { %2869 = vst [vmem:[#allocation3_spill] sm:$0xff] %v2481_v22  ;;  %v614_v21 = vadd.f32 %v2799_v56, %v613_v16  ;;  %v641_v18 = vadd.f32 %v2827_v29, %v640_v19  ;;  %v2871_v22 = vld [vmem:[#allocation30_spill] sm:$0xff] }
 0x2b3   :  { %v668_v24 = vadd.f32 %v2871_v22, %v667_v59  ;;  %v692_v26 = vadd.f32 %v1850_v3, %v691_v0 }
 0x30c   :  { %v605_v15 = vpop.f32.mrf.mxu0  ;;  %v637_v14 = vpop.f32.mrf.mxu1 }
 0x30d   :  { %v615_v13 = vadd.f32 %v614_v21, %v605_v15  ;;  %v642_v20 = vadd.f32 %v641_v18, %v637_v14 }
 0x30f   :  { %v616_v58 = vmul.f32 0.5, %v615_v13  ;;  %v643_v12 = vmul.f32 0.5, %v642_v20 }
 0x311   :  { %1133 = vtanh.f32 %v616_v58 }
 0x312   :  { %1135 = vtanh.f32 %v643_v12 }
 0x313   :  { %v664_v6 = vpop.f32.mrf.mxu2  ;;  %v688_v56 = vpop.f32.mrf.mxu3 }
 0x314   :  { %v669_v16 = vadd.f32 %v668_v24, %v664_v6  ;;  %v693_v29 = vadd.f32 %v692_v26, %v688_v56  ;;  %v2605_v26 = vld [vmem:[%s2637_s2 + $0x3] ss:$0 sm:$0xff] }
 0x316   :  { %1137 = vtanh.f32 %v669_v16  ;;  %v694_v19 = vmul.f32 0.5, %v693_v29 }
 0x317   :  { %v1134_v15 = vpop.eup %1133 }
 0x318   :  { %v1136_v14 = vpop.eup %1135  ;;  %v618_v18 = vadd.f32 1.0, %v1134_v15  ;;  %1139 = vtanh.f32 %v694_v19 }
 0x319   :  { %v645_v35 = vadd.f32 1.0, %v1136_v14 }
 0x31a   :  { %v619_v1 = vmul.f32 0.5, %v618_v18 }
 0x31b   :  { %v646_v13 = vmul.f32 0.5, %v645_v35 }
 0x31c   :  { %v1138_v21 = vpop.eup %1137 }
 0x31d   :  { %v698_v58 = vmul.f32 %v646_v13, %v2332_v17  ;;  %v699_v12 = vmul.f32 %v1138_v21, %v619_v1 }
 0x31e   :  { %v1140_v59 = vpop.eup %1139 }
 0x31f   :  { %v2493_v20 = vadd.f32 %v699_v12, %v698_v58  ;;  %v696_v3 = vadd.f32 1.0, %v1140_v59 }
 0x321   :  { %1141 = vtanh.f32 %v2493_v20  ;;  %v697_v0 = vmul.f32 0.5, %v696_v3 }
 0x327   :  { %v1142_v6 = vpop.eup %1141 }
 0x328   :  { %v702_v22 = vmul.f32 %v1142_v6, %v697_v0 }
 0x32a   :  { %721 = vmatmul.f32.vlgmr.msrb.gmra.mxu0 %v702_v22  ;;  %753 = vmatmul.f32.vlgmr.msrb.gmra.mxu1 %v702_v22 }
 0x32b   :  { %780 = vmatmul.f32.vlgmr.msrb.gmra.mxu2 %v702_v22  ;;  %804 = vmatmul.f32.vlgmr.msrb.gmra.mxu3 %v702_v22 }
 0x32c   :  { %939 = vmatpush.msrb.mxu0 %v2021_v2  ;;  %971 = vmatpush.msrb.mxu1 %v2027_v62  ;;  %v2872_v2 = vld [vmem:[#allocation8_spill] sm:$0xff]  ;;  %v2873_v62 = vld [vmem:[#allocation9_spill] sm:$0xff] }
 0x32d   :  { %998 = vmatpush.msrb.mxu2 %v2033_v4  ;;  %1022 = vmatpush.msrb.mxu3 %v2039_v5  ;;  %v2874_v4 = vld [vmem:[#allocation10_spill] sm:$0xff]  ;;  %v2875_v5 = vld [vmem:[#allocation11_spill] sm:$0xff] }
 0x32e   :  { %940 = vmatpush.msrb.mxu0 %v2045_v23  ;;  %972 = vmatpush.msrb.mxu1 %v2051_v25  ;;  %v2876_v23 = vld [vmem:[#allocation12_spill] sm:$0xff]  ;;  %v2877_v25 = vld [vmem:[#allocation13_spill] sm:$0xff] }
 0x32f   :  { %999 = vmatpush.msrb.mxu2 %v2057_v27  ;;  %1023 = vmatpush.msrb.mxu3 %v2063_v28  ;;  %v2878_v27 = vld [vmem:[#allocation14_spill] sm:$0xff]  ;;  %v2879_v28 = vld [vmem:[#allocation15_spill] sm:$0xff] }
 0x330   :  { %941 = vmatpush.msrb.mxu0 %v2069_v30  ;;  %973 = vmatpush.msrb.mxu1 %v2075_v31  ;;  %v2880_v30 = vld [vmem:[#allocation16_spill] sm:$0xff]  ;;  %v2881_v31 = vld [vmem:[#allocation17_spill] sm:$0xff] }
 0x331   :  { %1000 = vmatpush.msrb.mxu2 %v2081_v32  ;;  %1024 = vmatpush.msrb.mxu3 %v2087_v33  ;;  %v2882_v32 = vld [vmem:[#allocation18_spill] sm:$0xff]  ;;  %v2883_v33 = vld [vmem:[#allocation19_spill] sm:$0xff] }
 0x332   :  { %942 = vmatpush.msrb.mxu0 %v2093_v34  ;;  %974 = vmatpush.msrb.mxu1 %v2099_v36  ;;  %v2884_v34 = vld [vmem:[#allocation20_spill] sm:$0xff]  ;;  %v2885_v36 = vld [vmem:[#allocation21_spill] sm:$0xff] }
 0x333   :  { %1001 = vmatpush.msrb.mxu2 %v2105_v38  ;;  %1025 = vmatpush.msrb.mxu3 %v2111_v39  ;;  %v2886_v38 = vld [vmem:[#allocation22_spill] sm:$0xff]  ;;  %v2887_v39 = vld [vmem:[#allocation23_spill] sm:$0xff] }
 0x334   :  { %943 = vmatpush.msrb.mxu0 %v2117_v40  ;;  %975 = vmatpush.msrb.mxu1 %v2123_v42  ;;  %v2888_v40 = vld [vmem:[#allocation24_spill] sm:$0xff]  ;;  %v2889_v42 = vld [vmem:[#allocation25_spill] sm:$0xff] }
 0x335   :  { %1002 = vmatpush.msrb.mxu2 %v2129_v52  ;;  %1026 = vmatpush.msrb.mxu3 %v2135_v45  ;;  %v2890_v52 = vld [vmem:[#allocation27_spill] sm:$0xff]  ;;  %v2891_v45 = vld [vmem:[#allocation28_spill] sm:$0xff] }
 0x336   :  { %944 = vmatpush.msrb.mxu0 %v2141_v46  ;;  %976 = vmatpush.msrb.mxu1 %v2147_v60  ;;  %v2892_v46 = vld [vmem:[#allocation26_spill] sm:$0xff] }
 0x337   :  { %1003 = vmatpush.msrb.mxu2 %v2153_v61  ;;  %1027 = vmatpush.msrb.mxu3 %v2159_v50  ;;  %v2893_v60 = vld [vmem:[#allocation2_spill] sm:$0xff]  ;;  %v2894_v61 = vld [vmem:[#allocation3_spill] sm:$0xff]  ;;  %v728_v50 = vpop.permute.xlu2 %727 }
 0x338   :  { %945 = vmatpush.msrb.mxu0 %v2165_v57  ;;  %977 = vmatpush.msrb.mxu1 %v2171_v63  ;;  %v2563_v57 = vld [vmem:[%s2636_s1] ss:$0 sm:$0xff] }
 0x339   :  { %1004 = vmatpush.msrb.mxu2 %v2177_v51  ;;  %1028 = vmatpush.msrb.mxu3 %v2183_v48  ;;  %v730_v63 = vmul.f32 %v2563_v57, %v728_v50  ;;  %v2569_v51 = vld [vmem:[%s2636_s1 + $0x1] ss:$0 sm:$0xff] }
 0x33a   :  { %946 = vmatpush.msrb.mxu0 %v2189_v47  ;;  %978 = vmatpush.msrb.mxu1 %v2195_v53  ;;  %v757_v48 = vmul.f32 %v2569_v51, %v728_v50  ;;  %v2575_v47 = vld [vmem:[%s2637_s2] ss:$0 sm:$0xff] }
 0x33b   :  { %1005 = vmatpush.msrb.mxu2 %v2201_v43  ;;  %1029 = vmatpush.msrb.mxu3 %v2207_v54  ;;  %v731_v53 = vadd.f32 %v2575_v47, %v730_v63  ;;  %v2581_v43 = vld [vmem:[%s2637_s2 + $0x1] ss:$0 sm:$0xff] }
 0x33c   :  { %947 = vmatpush.msrb.mxu0 %v2213_v49  ;;  %979 = vmatpush.msrb.mxu1 %v2219_v44  ;;  %v758_v54 = vadd.f32 %v2581_v43, %v757_v48 }
 0x33d   :  { %1006 = vmatpush.msrb.mxu2 %v2844_v37  ;;  %1030 = vmatpush.msrb.mxu3 %v2845_v41  ;;  %v2587_v41 = vld [vmem:[%s2636_s1 + $0x2] ss:$0 sm:$0xff] }
 0x33e   :  { %948 = vmatpush.msrb.mxu0 %v2846_v55  ;;  %980 = vmatpush.msrb.mxu1 %v2847_v8  ;;  %v784_v55 = vmul.f32 %v2587_v41, %v728_v50  ;;  %v2593_v8 = vld [vmem:[%s2636_s1 + $0x3] ss:$0 sm:$0xff] }
 0x33f   :  { %1007 = vmatpush.msrb.mxu2 %v2848_v9  ;;  %1031 = vmatpush.msrb.mxu3 %v2849_v10  ;;  %v808_v9 = vmul.f32 %v2593_v8, %v728_v50 }
 0x340   :  { %949 = vmatpush.msrb.mxu0 %v2850_v11  ;;  %981 = vmatpush.msrb.mxu1 %v2872_v2  ;;  %v785_v24 = vadd.f32 %v2599_v7, %v784_v55 }
 0x341   :  { %1008 = vmatpush.msrb.mxu2 %v2873_v62  ;;  %1032 = vmatpush.msrb.mxu3 %v2874_v4  ;;  %v809_v56 = vadd.f32 %v2605_v26, %v808_v9 }
 0x342   :  { %950 = vmatpush.msrb.mxu0 %v2875_v5  ;;  %982 = vmatpush.msrb.mxu1 %v2876_v23  ;;  %v845_v5 = vpop.permute.xlu0 %844 }
 0x343   :  { %1009 = vmatpush.msrb.mxu2 %v2877_v25  ;;  %1033 = vmatpush.msrb.mxu3 %v2878_v27  ;;  %v847_v23 = vmul.f32 %v2563_v57, %v845_v5  ;;  %v874_v25 = vmul.f32 %v2569_v51, %v845_v5 }
 0x344   :  { %951 = vmatpush.msrb.mxu0 %v2879_v28  ;;  %983 = vmatpush.msrb.mxu1 %v2880_v30 }
 0x345   :  { %1010 = vmatpush.msrb.mxu2 %v2881_v31  ;;  %1034 = vmatpush.msrb.mxu3 %v2882_v32  ;;  %v848_v27 = vadd.f32 %v2575_v47, %v847_v23 }
 0x346   :  { %952 = vmatpush.msrb.mxu0 %v2883_v33  ;;  %984 = vmatpush.msrb.mxu1 %v2884_v34  ;;  %v901_v33 = vmul.f32 %v2587_v41, %v845_v5  ;;  %v925_v34 = vmul.f32 %v2593_v8, %v845_v5 }
 0x347   :  { %1011 = vmatpush.msrb.mxu2 %v2885_v36  ;;  %1035 = vmatpush.msrb.mxu3 %v2886_v38 }
 0x348   :  { %953 = vmatpush.msrb.mxu0 %v2887_v39  ;;  %985 = vmatpush.msrb.mxu1 %v2888_v40  ;;  %v902_v39 = vadd.f32 %v2599_v7, %v901_v33  ;;  %v926_v40 = vadd.f32 %v2605_v26, %v925_v34 }
 0x349   :  { %1012 = vmatpush.msrb.mxu2 %v2889_v42  ;;  %1036 = vmatpush.msrb.mxu3 %v2890_v52 }
 0x34a   :  { %954 = vmatpush.msrb.mxu0 %v2891_v45  ;;  %986 = vmatpush.msrb.mxu1 %v2892_v46 }
 0x34b   :  { %1013 = vmatpush.msrb.mxu2 %v2893_v60  ;;  %1037 = vmatpush.msrb.mxu3 %v2894_v61 }
 0x3a7   :  { %v722_v49 = vpop.f32.mrf.mxu0  ;;  %v754_v44 = vpop.f32.mrf.mxu1 }
 0x3a8   :  { %v732_v17 = vadd.f32 %v731_v53, %v722_v49  ;;  %v759_v37 = vadd.f32 %v758_v54, %v754_v44 }
 0x3aa   :  { %v733_v10 = vmul.f32 0.5, %v732_v17  ;;  %v760_v11 = vmul.f32 0.5, %v759_v37 }
 0x3ac   :  { %1143 = vtanh.f32 %v733_v10 }
 0x3ad   :  { %1145 = vtanh.f32 %v760_v11 }
 0x3ae   :  { %v781_v16 = vpop.f32.mrf.mxu2  ;;  %v805_v29 = vpop.f32.mrf.mxu3 }
 0x3af   :  { %v786_v19 = vadd.f32 %v785_v24, %v781_v16  ;;  %v810_v15 = vadd.f32 %v809_v56, %v805_v29  ;;  %v962_v56 = vpop.permute.xlu1 %961 }
 0x3b0   :  { %v964_v16 = vmul.f32 %v2563_v57, %v962_v56  ;;  %v991_v29 = vmul.f32 %v2569_v51, %v962_v56 }
 0x3b1   :  { %1147 = vtanh.f32 %v786_v19  ;;  %v811_v14 = vmul.f32 0.5, %v810_v15 }
 0x3b2   :  { %v1144_v18 = vpop.eup %1143  ;;  %v965_v19 = vadd.f32 %v2575_v47, %v964_v16  ;;  %v992_v15 = vadd.f32 %v2581_v43, %v991_v29 }
 0x3b3   :  { %v1146_v35 = vpop.eup %1145  ;;  %v735_v1 = vadd.f32 1.0, %v1144_v18  ;;  %1149 = vtanh.f32 %v811_v14 }
 0x3b4   :  { %v762_v13 = vadd.f32 1.0, %v1146_v35 }
 0x3b5   :  { %v736_v21 = vmul.f32 0.5, %v735_v1 }
 0x3b6   :  { %v763_v58 = vmul.f32 0.5, %v762_v13  ;;  %v1018_v13 = vmul.f32 %v2587_v41, %v962_v56 }
 0x3b7   :  { %v1148_v12 = vpop.eup %1147 }
 0x3b8   :  { %v815_v59 = vmul.f32 %v763_v58, %v2493_v20  ;;  %v816_v3 = vmul.f32 %v1148_v12, %v736_v21  ;;  %v875_v20 = vadd.f32 %v2581_v43, %v874_v25  ;;  %v1042_v21 = vmul.f32 %v2593_v8, %v962_v56 }
 0x3b9   :  { %v1150_v0 = vpop.eup %1149  ;;  %v1019_v57 = vadd.f32 %v2599_v7, %v1018_v13 }
 0x3ba   :  { %v817_v6 = vadd.f32 %v816_v3, %v815_v59  ;;  %v813_v22 = vadd.f32 1.0, %v1150_v0  ;;  %v1043_v51 = vadd.f32 %v2605_v26, %v1042_v21 }
 0x3bc   :  { %1151 = vtanh.f32 %v817_v6  ;;  %v814_v2 = vmul.f32 0.5, %v813_v22 }
 0x3c2   :  { %v1152_v62 = vpop.eup %1151 }
 0x3c3   :  { %v819_v4 = vmul.f32 %v1152_v62, %v814_v2 }
 0x3c5   :  { %838 = vmatmul.f32.vlgmr.msra.gmra.mxu0 %v819_v4  ;;  %870 = vmatmul.f32.vlgmr.msra.gmra.mxu1 %v819_v4 }
 0x3c6   :  { %897 = vmatmul.f32.vlgmr.msra.gmra.mxu2 %v819_v4  ;;  %921 = vmatmul.f32.vlgmr.msra.gmra.mxu3 %v819_v4 }
 0x442   :  { %v839_v28 = vpop.f32.mrf.mxu0  ;;  %v871_v30 = vpop.f32.mrf.mxu1 }
 0x443   :  { %v849_v31 = vadd.f32 %v848_v27, %v839_v28  ;;  %v876_v32 = vadd.f32 %v875_v20, %v871_v30  ;;  %v1091_v20 = vld [vmem:[%s2638_s4] ss:$0 sm:$0xff] }
 0x445   :  { %v850_v36 = vmul.f32 0.5, %v849_v31  ;;  %v877_v38 = vmul.f32 0.5, %v876_v32  ;;  %v1092_v32 = vld [vmem:[%s2639_s5] ss:$0 sm:$0xff] }
 0x447   :  { %1153 = vtanh.f32 %v850_v36 }
 0x448   :  { %1155 = vtanh.f32 %v877_v38 }
 0x449   :  { %v898_v42 = vpop.f32.mrf.mxu2  ;;  %v922_v52 = vpop.f32.mrf.mxu3 }
 0x44a   :  { %v903_v45 = vadd.f32 %v902_v39, %v898_v42  ;;  %v927_v46 = vadd.f32 %v926_v40, %v922_v52 }
 0x44c   :  { %1157 = vtanh.f32 %v903_v45  ;;  %v928_v60 = vmul.f32 0.5, %v927_v46 }
 0x44d   :  { %v1154_v61 = vpop.eup %1153 }
 0x44e   :  { %v1156_v50 = vpop.eup %1155  ;;  %v852_v63 = vadd.f32 1.0, %v1154_v61  ;;  %1159 = vtanh.f32 %v928_v60 }
 0x44f   :  { %v879_v48 = vadd.f32 1.0, %v1156_v50 }
 0x450   :  { %v853_v53 = vmul.f32 0.5, %v852_v63 }
 0x451   :  { %v880_v54 = vmul.f32 0.5, %v879_v48 }
 0x452   :  { %v1158_v49 = vpop.eup %1157 }
 0x453   :  { %v932_v44 = vmul.f32 %v880_v54, %v817_v6  ;;  %v933_v17 = vmul.f32 %v1158_v49, %v853_v53 }
 0x454   :  { %v1160_v37 = vpop.eup %1159 }
 0x455   :  { %v934_v55 = vadd.f32 %v933_v17, %v932_v44  ;;  %v930_v9 = vadd.f32 1.0, %v1160_v37 }
 0x457   :  { %1161 = vtanh.f32 %v934_v55  ;;  %v931_v10 = vmul.f32 0.5, %v930_v9 }
 0x45d   :  { %v1162_v11 = vpop.eup %1161 }
 0x45e   :  { %v936_v24 = vmul.f32 %v1162_v11, %v931_v10 }
 0x460   :  { %955 = vmatmul.f32.vlgmr.msrb.gmra.mxu0 %v936_v24  ;;  %987 = vmatmul.f32.vlgmr.msrb.gmra.mxu1 %v936_v24 }
 0x461   :  { %1014 = vmatmul.f32.vlgmr.msrb.gmra.mxu2 %v936_v24  ;;  %1038 = vmatmul.f32.vlgmr.msrb.gmra.mxu3 %v936_v24 }
 0x4dd   :  { %v956_v14 = vpop.f32.mrf.mxu0  ;;  %v988_v18 = vpop.f32.mrf.mxu1 }
 0x4de   :  { %v966_v35 = vadd.f32 %v965_v19, %v956_v14  ;;  %v993_v1 = vadd.f32 %v992_v15, %v988_v18 }
 0x4e0   :  { %v967_v58 = vmul.f32 0.5, %v966_v35  ;;  %v994_v12 = vmul.f32 0.5, %v993_v1 }
 0x4e2   :  { %1163 = vtanh.f32 %v967_v58 }
 0x4e3   :  { %1165 = vtanh.f32 %v994_v12 }
 0x4e4   :  { %v1015_v59 = vpop.f32.mrf.mxu2  ;;  %v1039_v47 = vpop.f32.mrf.mxu3 }
 0x4e5   :  { %v1020_v3 = vadd.f32 %v1019_v57, %v1015_v59  ;;  %v1044_v43 = vadd.f32 %v1043_v51, %v1039_v47 }
 0x4e7   :  { %1167 = vtanh.f32 %v1020_v3  ;;  %v1045_v0 = vmul.f32 0.5, %v1044_v43 }
 0x4e8   :  { %v1164_v6 = vpop.eup %1163 }
 0x4e9   :  { %v1166_v22 = vpop.eup %1165  ;;  %v969_v2 = vadd.f32 1.0, %v1164_v6  ;;  %1169 = vtanh.f32 %v1045_v0 }
 0x4ea   :  { %v996_v41 = vadd.f32 1.0, %v1166_v22 }
 0x4eb   :  { %v970_v8 = vmul.f32 0.5, %v969_v2 }
 0x4ec   :  { %v997_v62 = vmul.f32 0.5, %v996_v41 }
 0x4ed   :  { %v1168_v4 = vpop.eup %1167 }
 0x4ee   :  { %v1049_v5 = vmul.f32 %v997_v62, %v934_v55  ;;  %v1050_v23 = vmul.f32 %v1168_v4, %v970_v8 }
 0x4ef   :  { %v1170_v25 = vpop.eup %1169 }
 0x4f0   :  { %v1051_v7 = vadd.f32 %v1050_v23, %v1049_v5  ;;  %v1047_v26 = vadd.f32 1.0, %v1170_v25 }
 0x4f2   :  { %1171 = vtanh.f32 %v1051_v7  ;;  %v1048_v27 = vmul.f32 0.5, %v1047_v26 }
 0x4f8   :  { %v1172_v28 = vpop.eup %1171 }
 0x4f9   :  { %v1053_v30 = vmul.f32 %v1172_v28, %v1048_v27 }
 0x4fb   :  { %v1058_v31 = vmul.f32 %v1091_v20, %v1053_v30 }
 0x4fd   :  { %1059 = vadd.xlane.f32.xlu2 %v1058_v31 }
 0x570   :  { %v1060_v33 = vpop.xlane.xlu2 %1059 }
 0x571   :  { %v1065_v34 = vadd.f32 %v1092_v32, %v1060_v33 }
 0x573   :  { %1066 = vst [vmem:[%s2640_s6] sm:$0xff] %v1065_v34 }

</bundles_post_ra>
